<compile_context>
chip_gen: v5e
topology: v5e:2x2
jax: 0.10.0
libtpu: 0.0.40
codegen_flags: <defaults>
</compile_context>

<pallas_src>
import functools

import jax
import jax.numpy as jnp
from jax import lax
from jax.experimental import pallas as pl
from jax.experimental.pallas import tpu as pltpu


def _round_up(x, m):
    return (x + m - 1) // m * m


def _repvgg3x3_kernel(x_ref, w_ref, b_ref, o_ref, *, TR, Wc, Cin_p):
    """Re-parameterized 3x3 conv + bias + ReLU on one output-row tile.

    x_ref : (1, H_pad, Wc + 2, Cin_p)   full padded NHWC image (per batch n)
    w_ref : (9 * Cin_p, C_BLK)          folded weights, (kh,kw)-major, ci-minor
    b_ref : (1, C_BLK)                  folded bias (f32)
    o_ref : (1, TR, Wc, C_BLK)          output row tile
    """
    r = pl.program_id(2)
    row0 = pl.multiple_of(r * TR, TR)

    # Haloed row slab for this tile (2 extra rows / 2 extra cols).  Widen to
    # f32 so the tap slicing below stays on the well-supported f32 layout path
    # even when the streamed activations are bf16.
    slab = x_ref[0, pl.ds(row0, TR + 2), :, :].astype(jnp.float32)

    # Build the 9-tap im2col operand once per tile: kh offsets are free
    # (major-dim slices), kw offsets are static sublane slices; lane-concat of
    # 128-aligned chunks.
    taps = [slab[kh:kh + TR, kw:kw + Wc, :]
            for kh in range(3) for kw in range(3)]
    patches = jnp.concatenate(taps, axis=-1)              # (TR, Wc, 9*Cin_p)
    patches = patches.reshape(TR * Wc, 9 * Cin_p)

    # Single MXU contraction with K = 9*Cin_p, f32 accumulation.
    acc = jnp.dot(patches.astype(w_ref.dtype), w_ref[...],
                  preferred_element_type=jnp.float32)

    # Fused epilogue: bias + ReLU + cast feeding the store.
    acc = jnp.maximum(acc + b_ref[...], 0.0)
    o_ref[0] = acc.reshape(TR, Wc, o_ref.shape[-1]).astype(o_ref.dtype)


def _fold_conv_bn(w, gamma, beta, mean, var, eps):
    s = gamma / jnp.sqrt(var + eps)
    return w * s[:, None, None, None], beta - mean * s


def repvgg_block_forward(x_nchw, params, *, eps=1e-5,
                         compute_dtype=jnp.float32, row_tile=8):
    """RepVGGBlock forward (non-deploy, kernel_size=3, padding=0, stride=1)."""
    N, Cin, H, W = x_nchw.shape
    Cout = params["w3"].shape[0]
    Ho, Wo = H - 2, W - 2

    # ---- RepVGG re-parameterization (eval-mode BN) -- plain-JAX glue ----
    k3, b3 = _fold_conv_bn(params["w3"], params["g3"], params["b3"],
                           params["m3"], params["v3"], eps)
    k1, b1 = _fold_conv_bn(params["w1"], params["g1"], params["b1"],
                           params["m1"], params["v1"], eps)
    w_eq = k3 + jnp.pad(k1, ((0, 0), (0, 0), (1, 1), (1, 1)))
    b_eq = b3 + b1
    if ("gi" in params) and (Cin == Cout):
        si = params["gi"] / jnp.sqrt(params["vi"] + eps)
        kid = jnp.zeros((Cout, Cin, 3, 3), jnp.float32)
        kid = kid.at[jnp.arange(Cout), jnp.arange(Cin), 1, 1].set(si)
        w_eq = w_eq + kid
        b_eq = b_eq + params["bi"] - params["mi"] * si

    # ---- Padded / tiled geometry ----
    Cin_p = _round_up(Cin, 128)            # lane-aligned K chunks
    Cout_p = _round_up(Cout, 128)          # lane-dense output
    TR = max(1, min(row_tile, Ho))         # output rows per tile
    Ho_pad = _round_up(Ho, TR)
    Wc = _round_up(Wo, 8)                  # sublane-aligned output width
    H_pad, Wp = Ho_pad + 2, Wc + 2
    C_BLK = 256 if Cout_p % 256 == 0 else 128

    # (3,3,Cin_p,Cout_p) HWIO weights -> (9*Cin_p, Cout_p) matmul matrix
    # (zero-padded channels so garbage lanes stay exactly zero).
    w_hwio = jnp.transpose(w_eq, (2, 3, 1, 0))                  # (3,3,Cin,Cout)
    w_pad = jnp.zeros((3, 3, Cin_p, Cout_p), jnp.float32)
    w_pad = w_pad.at[:, :, :Cin, :Cout].set(w_hwio)
    w_mat = w_pad.reshape(9 * Cin_p, Cout_p).astype(compute_dtype)
    b_pad = jnp.zeros((1, Cout_p), jnp.float32).at[0, :Cout].set(b_eq)

    # NCHW -> padded NHWC (zero padding only feeds output rows/cols/channels
    # that are sliced off below).
    x_nhwc = jnp.transpose(x_nchw, (0, 2, 3, 1))
    x_p = jnp.pad(x_nhwc, ((0, 0), (0, H_pad - H), (0, Wp - W),
                           (0, Cin_p - Cin))).astype(compute_dtype)

    grid = (N, Cout_p // C_BLK, Ho_pad // TR)
    kernel = functools.partial(_repvgg3x3_kernel, TR=TR, Wc=Wc, Cin_p=Cin_p)

    out = pl.pallas_call(
        kernel,
        out_shape=jax.ShapeDtypeStruct((N, Ho_pad, Wc, Cout_p), x_nchw.dtype),
        grid_spec=pltpu.PrefetchScalarGridSpec(
            num_scalar_prefetch=0,
            grid=grid,
            in_specs=[
                # full padded image, re-DMA'd only when n changes
                pl.BlockSpec((1, H_pad, Wp, Cin_p),
                             lambda n, c, r: (n, 0, 0, 0)),
                # weight block, re-DMA'd only when the Cout block changes
                pl.BlockSpec((9 * Cin_p, C_BLK), lambda n, c, r: (0, c)),
                pl.BlockSpec((1, C_BLK), lambda n, c, r: (0, c)),
            ],
            out_specs=pl.BlockSpec((1, TR, Wc, C_BLK),
                                   lambda n, c, r: (n, r, 0, c)),
        ),
        compiler_params=pltpu.CompilerParams(
            dimension_semantics=("parallel", "parallel", "parallel"),
            vmem_limit_bytes=32 * 1024 * 1024),
    )(x_p, w_mat, b_pad)

    # Drop padding, return NCHW to match the PyTorch module.
    out = out[:, :Ho, :Wo, :Cout]
    return jnp.transpose(out, (0, 3, 1, 2))


def reference_forward(x_nchw, params, eps=1e-5):
    """Pure-JAX reference mirroring the PyTorch forward (BN in eval mode)."""
    def bn(y, g, b, m, v):
        g = g.reshape(1, -1, 1, 1)
        b = b.reshape(1, -1, 1, 1)
        m = m.reshape(1, -1, 1, 1)
        v = v.reshape(1, -1, 1, 1)
        return g * (y - m) / jnp.sqrt(v + eps) + b

    dn = ("NCHW", "OIHW", "NCHW")
    dense = lax.conv_general_dilated(x_nchw, params["w3"], (1, 1), "VALID",
                                     dimension_numbers=dn)
    dense = bn(dense, params["g3"], params["b3"], params["m3"], params["v3"])

    t = x_nchw[:, :, 1:-1, 1:-1]
    one = lax.conv_general_dilated(t, params["w1"], (1, 1), "VALID",
                                   dimension_numbers=dn)
    one = bn(one, params["g1"], params["b1"], params["m1"], params["v1"])

    if "gi" in params:
        ident = bn(t, params["gi"], params["bi"], params["mi"], params["vi"])
    else:
        ident = 0.0
    return jnp.maximum(dense + one + ident, 0.0)


def make_params(key, in_channels, out_channels):
    """Deterministic synthetic parameters (shapes match RepVGGBlock.__init__)."""
    ks = jax.random.split(key, 12)
    p = {
        # rbr_dense: Conv2d(Cin, Cout, 3, bias=False) + BatchNorm2d(Cout)
        "w3": jax.random.normal(ks[0], (out_channels, in_channels, 3, 3),
                                jnp.float32) * 0.1,
        "g3": jax.random.uniform(ks[1], (out_channels,), jnp.float32, 0.5, 1.5),
        "b3": jax.random.normal(ks[2], (out_channels,), jnp.float32) * 0.1,
        "m3": jax.random.normal(ks[3], (out_channels,), jnp.float32) * 0.1,
        "v3": jax.random.uniform(ks[4], (out_channels,), jnp.float32, 0.5, 1.5),
        # rbr_1x1: Conv2d(Cin, Cout, 1, bias=False) + BatchNorm2d(Cout)
        "w1": jax.random.normal(ks[5], (out_channels, in_channels, 1, 1),
                                jnp.float32) * 0.1,
        "g1": jax.random.uniform(ks[6], (out_channels,), jnp.float32, 0.5, 1.5),
        "b1": jax.random.normal(ks[7], (out_channels,), jnp.float32) * 0.1,
        "m1": jax.random.normal(ks[8], (out_channels,), jnp.float32) * 0.1,
        "v1": jax.random.uniform(ks[9], (out_channels,), jnp.float32, 0.5, 1.5),
    }
    if in_channels == out_channels:
        # rbr_identity: BatchNorm2d(Cin)
        ki = jax.random.split(ks[10], 5)
        p.update({
            "gi": jax.random.uniform(ki[0], (in_channels,), jnp.float32, 0.5, 1.5),
            "bi": jax.random.normal(ki[1], (in_channels,), jnp.float32) * 0.1,
            "mi": jax.random.normal(ki[2], (in_channels,), jnp.float32) * 0.1,
            "vi": jax.random.uniform(ki[3], (in_channels,), jnp.float32, 0.5, 1.5),
        })
    return p


if __name__ == "__main__":
    key = jax.random.PRNGKey(0)
    kx, kp1, kp2 = jax.random.split(key, 3)

    N, C, H, W = 2, 4, 16, 16
    x = jax.random.normal(kx, (N, C, H, W), jnp.float32)     # NCHW like PyTorch

    # Case 1: Cin == Cout (identity branch present), f32 operands.
    params = make_params(kp1, in_channels=C, out_channels=C)
    ref = jax.block_until_ready(reference_forward(x, params))
    out = jax.block_until_ready(repvgg_block_forward(x, params))
    assert out.shape == (N, C, H - 2, W - 2), out.shape
    assert jnp.allclose(out, ref, atol=1e-3, rtol=1e-3), (
        float(jnp.max(jnp.abs(out - ref))))

    # Same layer with bf16 operands (v6e/v7x MXU path, f32 accumulation).
    out_bf16 = jax.block_until_ready(
        repvgg_block_forward(x, params, compute_dtype=jnp.bfloat16))
    assert jnp.allclose(out_bf16, ref, atol=1e-1, rtol=5e-2), (
        float(jnp.max(jnp.abs(out_bf16 - ref))))

    # Case 2: Cin != Cout (no identity branch).
    params2 = make_params(kp2, in_channels=C, out_channels=8)
    ref2 = jax.block_until_ready(reference_forward(x, params2))
    out2 = jax.block_until_ready(repvgg_block_forward(x, params2))
    assert out2.shape == (N, 8, H - 2, W - 2), out2.shape
    assert jnp.allclose(out2, ref2, atol=1e-3, rtol=1e-3), (
        float(jnp.max(jnp.abs(out2 - ref2))))

    print("KERNEL_OK")
</pallas_src>

<mosaic_0001>
module attributes {stable_mosaic.version = 11 : i64} {
  func.func @_repvgg3x3_kernel(%arg0: i32, %arg1: i32, %arg2: i32, %arg3: memref<1x18x18x128xf32, #tpu.memory_space<vmem>>, %arg4: memref<1152x128xf32, #tpu.memory_space<vmem>>, %arg5: memref<1x128xf32, #tpu.memory_space<vmem>>, %arg6: memref<1x8x16x128xf32, #tpu.memory_space<vmem>>) attributes {dimension_semantics = [#tpu.dimension_semantics<parallel>, #tpu.dimension_semantics<parallel>, #tpu.dimension_semantics<parallel>], iteration_bounds = array<i64: 2, 1, 2>, scalar_prefetch = 0 : i64, scratch_operands = 0 : i64, tpu.core_type = #tpu.core_type<tc>, window_params = [{transform_indices = @transform_0, window_bounds = array<i64: 1, 18, 18, 128>}, {transform_indices = @transform_1, window_bounds = array<i64: 1152, 128>}, {transform_indices = @transform_2, window_bounds = array<i64: 1, 128>}, {transform_indices = @transform_3, window_bounds = array<i64: 1, 8, 16, 128>}]} {
    %c8_i32 = arith.constant 8 : i32
    %0 = arith.muli %arg2, %c8_i32 : i32
    %1 = tpu.assume_multiple %0, 8 : i32
    %c0 = arith.constant 0 : index
    %2 = arith.index_cast %1 : i32 to index
    %c0_0 = arith.constant 0 : index
    %c0_1 = arith.constant 0 : index
    %3 = vector.load %arg3[%c0, %2, %c0_0, %c0_1] : memref<1x18x18x128xf32, #tpu.memory_space<vmem>>, vector<1x10x18x128xf32>
    %4 = vector.shape_cast %3 : vector<1x10x18x128xf32> to vector<10x18x128xf32>
    %5 = vector.extract_strided_slice %4 {offsets = [0, 0, 0], sizes = [8, 16, 128], strides = [1, 1, 1]} : vector<10x18x128xf32> to vector<8x16x128xf32>
    %6 = vector.extract_strided_slice %4 {offsets = [0, 1, 0], sizes = [8, 16, 128], strides = [1, 1, 1]} : vector<10x18x128xf32> to vector<8x16x128xf32>
    %7 = vector.extract_strided_slice %4 {offsets = [0, 2, 0], sizes = [8, 16, 128], strides = [1, 1, 1]} : vector<10x18x128xf32> to vector<8x16x128xf32>
    %8 = vector.extract_strided_slice %4 {offsets = [1, 0, 0], sizes = [8, 16, 128], strides = [1, 1, 1]} : vector<10x18x128xf32> to vector<8x16x128xf32>
    %9 = vector.extract_strided_slice %4 {offsets = [1, 1, 0], sizes = [8, 16, 128], strides = [1, 1, 1]} : vector<10x18x128xf32> to vector<8x16x128xf32>
    %10 = vector.extract_strided_slice %4 {offsets = [1, 2, 0], sizes = [8, 16, 128], strides = [1, 1, 1]} : vector<10x18x128xf32> to vector<8x16x128xf32>
    %11 = vector.extract_strided_slice %4 {offsets = [2, 0, 0], sizes = [8, 16, 128], strides = [1, 1, 1]} : vector<10x18x128xf32> to vector<8x16x128xf32>
    %12 = vector.extract_strided_slice %4 {offsets = [2, 1, 0], sizes = [8, 16, 128], strides = [1, 1, 1]} : vector<10x18x128xf32> to vector<8x16x128xf32>
    %13 = vector.extract_strided_slice %4 {offsets = [2, 2, 0], sizes = [8, 16, 128], strides = [1, 1, 1]} : vector<10x18x128xf32> to vector<8x16x128xf32>
    %14 = tpu.concatenate %5, %6, %7, %8, %9, %10, %11, %12, %13 in 2 : vector<8x16x128xf32>, vector<8x16x128xf32>, vector<8x16x128xf32>, vector<8x16x128xf32>, vector<8x16x128xf32>, vector<8x16x128xf32>, vector<8x16x128xf32>, vector<8x16x128xf32>, vector<8x16x128xf32> -> vector<8x16x1152xf32>
    %15 = vector.shape_cast %14 : vector<8x16x1152xf32> to vector<128x1152xf32>
    %c0_2 = arith.constant 0 : index
    %c0_3 = arith.constant 0 : index
    %16 = vector.load %arg4[%c0_2, %c0_3] : memref<1152x128xf32, #tpu.memory_space<vmem>>, vector<1152x128xf32>
    %cst = arith.constant dense<0.000000e+00> : vector<128x128xf32>
    %17 = tpu.matmul %15, %16, %cst {dimension_numbers = #tpu.dot_dimension_numbers<[1], [0], [0], [1], [0, 0, 1, 1], [], []>} : vector<128x1152xf32>, vector<1152x128xf32>, vector<128x128xf32> -> vector<128x128xf32>
    %c0_4 = arith.constant 0 : index
    %c0_5 = arith.constant 0 : index
    %18 = vector.load %arg5[%c0_4, %c0_5] : memref<1x128xf32, #tpu.memory_space<vmem>>, vector<1x128xf32>
    %19 = vector.broadcast %18 : vector<1x128xf32> to vector<128x128xf32>
    %20 = arith.addf %17, %19 : vector<128x128xf32>
    %cst_6 = arith.constant 0.000000e+00 : f32
    %21 = vector.broadcast %cst_6 : f32 to vector<128x128xf32>
    %22 = arith.maximumf %20, %21 : vector<128x128xf32>
    %23 = vector.shape_cast %22 : vector<128x128xf32> to vector<8x16x128xf32>
    %c0_7 = arith.constant 0 : index
    %c0_8 = arith.constant 0 : index
    %c0_9 = arith.constant 0 : index
    %c0_10 = arith.constant 0 : index
    %24 = vector.load %arg6[%c0_7, %c0_8, %c0_9, %c0_10] : memref<1x8x16x128xf32, #tpu.memory_space<vmem>>, vector<1x8x16x128xf32>
    %25 = vector.shape_cast %24 : vector<1x8x16x128xf32> to vector<8x16x128xf32>
    %26 = vector.shape_cast %23 : vector<8x16x128xf32> to vector<1x8x16x128xf32>
    tpu.vector_store %arg6[%c0_7, %c0_8, %c0_9, %c0_10], %26 {strides = array<i32>} : memref<1x8x16x128xf32, #tpu.memory_space<vmem>>, vector<1x8x16x128xf32>,
    return
  }
  func.func @transform_0(%arg0: i32, %arg1: i32, %arg2: i32) -> (i32, i32, i32, i32) {
    %c0_i32 = arith.constant 0 : i32
    %c0_i32_0 = arith.constant 0 : i32
    %c0_i32_1 = arith.constant 0 : i32
    %c0_i32_2 = arith.constant 0 : i32
    return %arg0, %c0_i32, %c0_i32_0, %c0_i32_1 : i32, i32, i32, i32
  }
  func.func @transform_1(%arg0: i32, %arg1: i32, %arg2: i32) -> (i32, i32) {
    %c0_i32 = arith.constant 0 : i32
    %c0_i32_0 = arith.constant 0 : i32
    return %c0_i32, %arg1 : i32, i32
  }
  func.func @transform_2(%arg0: i32, %arg1: i32, %arg2: i32) -> (i32, i32) {
    %c0_i32 = arith.constant 0 : i32
    %c0_i32_0 = arith.constant 0 : i32
    return %c0_i32, %arg1 : i32, i32
  }
  func.func @transform_3(%arg0: i32, %arg1: i32, %arg2: i32) -> (i32, i32, i32, i32) {
    %c0_i32 = arith.constant 0 : i32
    %c0_i32_0 = arith.constant 0 : i32
    return %arg0, %arg2, %c0_i32, %arg1 : i32, i32, i32, i32
  }
}

</mosaic_0001>

<bundles_post_ra>
// kernel: tpu_custom_call.1
= control target key start
LH: loop header
LB: loop body
LE: loop exit
PB: predicated region body
PF: predicated region fallthrough
CT: control target
= control target key end

     0   :  { %8 = vsyncpa [#allocation3], 0  ;;  %s2622_s0 = inlined_call_operand.vmem [shape: f32[2,18,18,128], index: 0, kind: input, shape index: {}]   ;;  %s2623_s1 = inlined_call_operand.vmem [shape: f32[1152,128], index: 1, kind: input, shape index: {}]   ;;  %s2624_s2 = inlined_call_operand.vmem [shape: f32[1,128], index: 2, kind: input, shape index: {}]   ;;  %s2625_s3 = inlined_call_operand.hbm [shape: f32[2,16,16,128], index: 3, kind: output, shape index: {}]  }
   0x1   :  { %10 = vsyncpa [#allocation3 + $0x1], 0  ;;  %s1587_s12 = smov 0   ;;  %s1589_s13 = smov 0  }
   0x2   :  { %s1591_s14 = smov 0   ;;  %s1593_s15 = smov 0  }
   0x3   :  { %s1595_s16 = smov 0   ;;  %s1597_s17 = smov 0  }
   0x4   :  { %s1599_s18 = smov 0   ;;  %s1601_s19 = smov 0  }
   0x5 LB: > { %s1323_s20 = sadd.s32 4294967295, %s1563_s19   ;;  %s1324_s21 = sadd.s32 4294967294, %s1563_s19   ;;  %s1563_s19 = sphi %s1601_s19, %s16_s19   ;;  %s1559_s18 = sphi %s1599_s18, %s2641_s18   ;;  %s1555_s17 = sphi %s1597_s17, %s2640_s17   ;;  %s1551_s16 = sphi %s1595_s16, %s2639_s16   ;;  %s1547_s15 = sphi %s1593_s15, %s2638_s15   ;;  %s1543_s14 = sphi %s1591_s14, %s2637_s14   ;;  %s1539_s13 = sphi %s1589_s13, %s2636_s13   ;;  %s1535_s12 = sphi %s1587_s12, %s2635_s12  }
   0x6   : > { %s28_s22 = sadd.s32 1, %s1555_s17  ;;  %s35_s23 = sadd.s32 1, %s1559_s18 }
   0x7   : > { %p29_p0 = scmp.ge.s32.totalorder %s28_s22, 2  ;;  %p134_p1 = scmp.ne.s32.totalorder %s1543_s14, %s1539_s13 }
   0x8   : > { %p135_p2 = scmp.eq.s32.totalorder %s1323_s20, 3  ;;  %p140_p5 = scmp.ne.s32.totalorder %s1539_s13, %s1535_s12 }
   0x9   : > { %s2643_s22 = smov (%p29_p0, %s28_s22), 0  ;;  %s2645_s23 = smov (!%p29_p0, %s35_s23), %s1559_s18 }
   0xa   : > { %s118_s24 = ssub.s32 %s1555_s17, %s2643_s22  ;;  %p1638_p3 = por %p135_p2, %p134_p1 }
   0xb   : > { %p37_p4 = scmp.ge.s32.totalorder %s2645_s23, 2  ;;  %p141_p6 = scmp.eq.s32.totalorder %s1324_s21, 3 }
   0xc   : > { %p1329_p7 = scmp.ge.s32.totalorder %s1563_s19, 1  ;;  %p180_p9 = scmp.lt.s32.totalorder %s1563_s19, 5 }
   0xd   : > { %s2647_s23 = smov (%p37_p4, %s2645_s23), 0  ;;  %p1647_p8 = por %p141_p6, %p140_p5 }
   0xe   : > { %s117_s27 = ssub.s32 %s1559_s18, %s2647_s23  ;;  %s124_s28 = sadd.s32 1, %s1543_s14 }
   0xf   : > { %s119_s29 = sor.u32 %s118_s24, %s117_s27  ;;  %p181_p10 = pnand %p1329_p7, %p180_p9 }
  0x10   : > { %p122_p11 = scmp.eq.s32.totalorder %s119_s29, 0 }
  0x11   : > { %184 = sbr.rel (%p181_p10) target bundleno = 484 (0x1e4), region = 32 }
  0x12   : > { %s1656_s30 = scalar_select %p122_p11, %s1543_s14, %s124_s28  }
  0x16   : > { %v444_v0 = vld [vmem:[%s2623_s1 + $0x78] sm:$0xff]  ;;  %v443_v1 = vld [vmem:[%s2623_s1 + $0x70] sm:$0xff]  ;;  %v442_v2 = vld [vmem:[%s2623_s1 + $0x68] sm:$0xff]  ;;  %p211_p12 = scmp.lt.s32.totalorder %s1551_s16, 1  ;;  %s1333_s4 = smul.u32 192, %s1547_s15  ;;  %vm338_vm0 = vcmask 1045504  }
  0x17   : > { %1342 = vmatpush.msra.mxu1 %v444_v0  ;;  %1343 = vmatpush.msra.mxu2 %v444_v0  ;;  %v441_v3 = vld [vmem:[%s2623_s1 + $0x60] sm:$0xff]  ;;  %v440_v4 = vld [vmem:[%s2623_s1 + $0x58] sm:$0xff]  ;;  %v439_v5 = vld [vmem:[%s2623_s1 + $0x50] sm:$0xff]  ;;  %vm281_vm1 = vcmask 1046528   ;;  %s1341_s27 = sshll.u32 %s1547_s15, 4  ;;  %s1337_s28 = sshll.u32 %s1551_s16, 5 }
  0x18   : > { %1344 = vmatpush.msra.mxu3 %v444_v0  ;;  %577 = vmatpush.msra.mxu0 %v444_v0  ;;  %v438_v6 = vld [vmem:[%s2623_s1 + $0x48] sm:$0xff]  ;;  %v437_v7 = vld [vmem:[%s2623_s1 + $0x40] sm:$0xff]  ;;  %v436_v8 = vld [vmem:[%s2623_s1 + $0x38] sm:$0xff]  ;;  %s212_s8 = scalar_select %p211_p12, %s1551_s16, 1 }
  0x19   : > { %1345 = vmatpush.msra.mxu1 %v443_v1  ;;  %1346 = vmatpush.msra.mxu2 %v443_v1  ;;  %v435_v9 = vld [vmem:[%s2623_s1 + $0x30] sm:$0xff]  ;;  %v434_v10 = vld [vmem:[%s2623_s1 + $0x28] sm:$0xff]  ;;  %v433_v11 = vld [vmem:[%s2623_s1 + $0x20] sm:$0xff]  ;;  %s1208_s29 = sadd.s32 %s1341_s27, %s1337_s28  ;;  %s1489_s27 = scalar_lea.hbm %s2625_s3, 512 }
  0x1a   : > { %1347 = vmatpush.msra.mxu3 %v443_v1  ;;  %578 = vmatpush.msra.mxu0 %v443_v1  ;;  %s1390_s21 = smul.u32 432, %s212_s8  ;;  %v432_v12 = vld [vmem:[%s2623_s1 + $0x18] sm:$0xff]  ;;  %v431_v13 = vld [vmem:[%s2623_s1 + $0x10] sm:$0xff]  ;;  %v430_v14 = vld [vmem:[%s2623_s1 + $0x8] sm:$0xff] }
  0x1b   : > { %1348 = vmatpush.msra.mxu1 %v442_v2  ;;  %1349 = vmatpush.msra.mxu2 %v442_v2  ;;  %v429_v15 = vld [vmem:[%s2623_s1] sm:$0xff]  ;;  %v476_v18 = vld [vmem:[%s2623_s1 + $0x178] sm:$0xff]  ;;  %v475_v21 = vld [vmem:[%s2623_s1 + $0x170] sm:$0xff] }
  0x1c   : > { %1350 = vmatpush.msra.mxu3 %v442_v2  ;;  %579 = vmatpush.msra.mxu0 %v442_v2  ;;  %s215_s7 = scalar_lea.vmem %s2622_s0, %s1390_s21  ;;  %v460_v19 = vld [vmem:[%s2623_s1 + $0xf8] sm:$0xff]  ;;  %v459_v23 = vld [vmem:[%s2623_s1 + $0xf0] sm:$0xff]  ;;  %v474_v24 = vld [vmem:[%s2623_s1 + $0x168] sm:$0xff] }
  0x1d   : > { %1351 = vmatpush.msra.mxu1 %v441_v3  ;;  %1352 = vmatpush.msra.mxu2 %v441_v3  ;;  %s1709_s20 = scalar_lea.vmem %s215_s7, %s1333_s4  ;;  %v492_v22 = vld [vmem:[%s2623_s1 + $0x1f8] sm:$0xff]  ;;  %v491_v25 = vld [vmem:[%s2623_s1 + $0x1f0] sm:$0xff]  ;;  %v458_v26 = vld [vmem:[%s2623_s1 + $0xe8] sm:$0xff]  ;;  %s1338_s4 = sshll.u32 %s1208_s29, 3 }
  0x1e   : > { %1353 = vmatpush.msra.mxu3 %v441_v3  ;;  %580 = vmatpush.msra.mxu0 %v441_v3  ;;  %v1715_v16 = vld [vmem:[%s1709_s20 + $0x30] sm:$0xff]  ;;  %v1718_v17 = vld [vmem:[%s1709_s20 + $0x60] sm:$0xff]  ;;  %v490_v29 = vld [vmem:[%s2623_s1 + $0x1e8] sm:$0xff]  ;;  %s1210_s16 = scalar_lea.hbm %s2625_s3, %s1338_s4 }
  0x1f   : > { %1354 = vmatpush.msra.mxu1 %v440_v4  ;;  %1355 = vmatpush.msra.mxu2 %v440_v4  ;;  %v1727_v20 = vld [vmem:[%s1709_s20 + $0x90] sm:$0xff]  ;;  %v1751_v27 = vld [vmem:[%s1709_s20] sm:$0xff]  ;;  %v1763_v31 = vld [vmem:[%s1709_s20 + $0x68] sm:$0xff]  ;;  %s1213_s7 = sshll.u32 %s1210_s16, 4  ;;  %s1214_s7 = int_to_ptr.hbm [resolvable:$true] %s1213_s7 }
  0x20   : > { %1356 = vmatpush.msra.mxu3 %v440_v4  ;;  %581 = vmatpush.msra.mxu0 %v440_v4  ;;  %v473_v28 = vld [vmem:[%s2623_s1 + $0x160] sm:$0xff]  ;;  %v1766_v32 = vld [vmem:[%s1709_s20 + $0x38] sm:$0xff]  ;;  %v471_v37 = vld [vmem:[%s2623_s1 + $0x150] sm:$0xff]  ;;  %s1483_s9 = sshra.s32 %s1214_s7, 4  ;;  %s1484_s9 = int_to_ptr.hbm [resolvable:$true] %s1483_s9 }
  0x21   : > { %1357 = vmatpush.msra.mxu1 %v439_v5  ;;  %1358 = vmatpush.msra.mxu2 %v439_v5  ;;  %v457_v30 = vld [vmem:[%s2623_s1 + $0xe0] sm:$0xff]  ;;  %v472_v33 = vld [vmem:[%s2623_s1 + $0x158] sm:$0xff]  ;;  %v455_v40 = vld [vmem:[%s2623_s1 + $0xd0] sm:$0xff]  ;;  %s1485_s10 = scalar_lea.hbm %s1484_s9, 128  ;;  %p1490_p2 = scmp.lt.s32.totalorder %s1484_s9, %s2625_s3 }
  0x22   : > { %1359 = vmatpush.msra.mxu3 %v439_v5  ;;  %582 = vmatpush.msra.mxu0 %v439_v5  ;;  %v489_v34 = vld [vmem:[%s2623_s1 + $0x1e0] sm:$0xff]  ;;  %v456_v35 = vld [vmem:[%s2623_s1 + $0xd8] sm:$0xff]  ;;  %v470_v41 = vld [vmem:[%s2623_s1 + $0x148] sm:$0xff]  ;;  %p1486_p13 = scmp.ne.s32.totalorder %s1484_s9, %s1485_s10  ;;  %p1491_p4 = scmp.lt.s32.totalorder %s1489_s27, %s1485_s10 }
  0x23   : > { %1360 = vmatpush.msra.mxu1 %v438_v6  ;;  %1361 = vmatpush.msra.mxu2 %v438_v6  ;;  %v1780_v36 = vld [vmem:[%s1709_s20 + $0x98] sm:$0xff]  ;;  %v487_v42 = vld [vmem:[%s2623_s1 + $0x1d0] sm:$0xff]  ;;  %v454_v44 = vld [vmem:[%s2623_s1 + $0xc8] sm:$0xff] }
  0x24   : > { %1362 = vmatpush.msra.mxu3 %v438_v6  ;;  %583 = vmatpush.msra.mxu0 %v438_v6  ;;  %v488_v38 = vld [vmem:[%s2623_s1 + $0x1d8] sm:$0xff]  ;;  %v507_v43 = vld [vmem:[%s2623_s1 + $0x270] sm:$0xff]  ;;  %v469_v45 = vld [vmem:[%s2623_s1 + $0x140] sm:$0xff]  ;;  %p1487_p0 = pnand %p1486_p13, %p1638_p3  ;;  %p1492_p5 = por %p1491_p4, %p1490_p2 }
  0x25   : > { %1363 = vmatpush.msra.mxu1 %v437_v7  ;;  %1364 = vmatpush.msra.mxu2 %v437_v7  ;;  %v508_v39 = vld [vmem:[%s2623_s1 + $0x278] sm:$0xff]  ;;  %v486_v46 = vld [vmem:[%s2623_s1 + $0x1c8] sm:$0xff]  ;;  %v453_v48 = vld [vmem:[%s2623_s1 + $0xc0] sm:$0xff] }
  0x26   : > { %1365 = vmatpush.msra.mxu3 %v437_v7  ;;  %584 = vmatpush.msra.mxu0 %v437_v7  ;;  %v506_v47 = vld [vmem:[%s2623_s1 + $0x268] sm:$0xff]  ;;  %v1821_v49 = vld [vmem:[%s1709_s20 + $0x78] sm:$0xff]  ;;  %v485_v52 = vld [vmem:[%s2623_s1 + $0x1c0] sm:$0xff]  ;;  %p1488_p1 = pneg %p1487_p0 }
  0x27   : > { %1366 = vmatpush.msra.mxu1 %v436_v8  ;;  %1367 = vmatpush.msra.mxu2 %v436_v8  ;;  %v1824_v50 = vld [vmem:[%s1709_s20 + $0x48] sm:$0xff]  ;;  %v468_v51 = vld [vmem:[%s2623_s1 + $0x138] sm:$0xff]  ;;  %v505_v53 = vld [vmem:[%s2623_s1 + $0x260] sm:$0xff] }
  0x28   : > { %1368 = vmatpush.msra.mxu3 %v436_v8  ;;  %585 = vmatpush.msra.mxu0 %v436_v8  ;;  %v452_v54 = vld [vmem:[%s2623_s1 + $0xb8] sm:$0xff]  ;;  %v1840_v55 = vld [vmem:[%s1709_s20 + $0x8] sm:$0xff]  ;;  %v467_v57 = vld [vmem:[%s2623_s1 + $0x130] sm:$0xff]  ;;  %p1493_p6 = pnand %p1492_p5, %p1488_p1 }
  0x29   : > { %1369 = vmatpush.msra.mxu1 %v435_v9  ;;  %1370 = vmatpush.msra.mxu2 %v435_v9  ;;  %v1844_v56 = vld [vmem:[%s1709_s20 + $0xa8] sm:$0xff]  ;;  %v484_v58 = vld [vmem:[%s2623_s1 + $0x1b8] sm:$0xff]  ;;  %v451_v60 = vld [vmem:[%s2623_s1 + $0xb0] sm:$0xff] }
  0x2a   : > { %1371 = vmatpush.msra.mxu3 %v435_v9  ;;  %586 = vmatpush.msra.mxu0 %v435_v9  ;;  %v504_v59 = vld [vmem:[%s2623_s1 + $0x258] sm:$0xff]  ;;  %v466_v61 = vld [vmem:[%s2623_s1 + $0x128] sm:$0xff]  ;;  %v483_v62 = vld [vmem:[%s2623_s1 + $0x1b0] sm:$0xff] }
  0x2b   : > { %1372 = vmatpush.msra.mxu1 %v434_v10  ;;  %1373 = vmatpush.msra.mxu2 %v434_v10  ;;  %v503_v63 = vld [vmem:[%s2623_s1 + $0x250] sm:$0xff]  ;;  %v450_v0 = vld [vmem:[%s2623_s1 + $0xa8] sm:$0xff]  ;;  %v465_v1 = vld [vmem:[%s2623_s1 + $0x120] sm:$0xff] }
  0x2c   : > { %1374 = vmatpush.msra.mxu3 %v434_v10  ;;  %587 = vmatpush.msra.mxu0 %v434_v10  ;;  %v482_v2 = vld [vmem:[%s2623_s1 + $0x1a8] sm:$0xff]  ;;  %v449_v4 = vld [vmem:[%s2623_s1 + $0xa0] sm:$0xff]  ;;  %v1888_v6 = vld [vmem:[%s1709_s20 + $0x50] sm:$0xff] }
  0x2d   : > { %1375 = vmatpush.msra.mxu1 %v433_v11  ;;  %1376 = vmatpush.msra.mxu2 %v433_v11  ;;  %v502_v3 = vld [vmem:[%s2623_s1 + $0x248] sm:$0xff]  ;;  %v1885_v5 = vld [vmem:[%s1709_s20 + $0x80] sm:$0xff]  ;;  %v464_v7 = vld [vmem:[%s2623_s1 + $0x118] sm:$0xff] }
  0x2e   : > { %1377 = vmatpush.msra.mxu3 %v433_v11  ;;  %588 = vmatpush.msra.mxu0 %v433_v11  ;;  %v481_v8 = vld [vmem:[%s2623_s1 + $0x1a0] sm:$0xff]  ;;  %v448_v10 = vld [vmem:[%s2623_s1 + $0x98] sm:$0xff] }
  0x2f   : > { %1378 = vmatpush.msra.mxu1 %v432_v12  ;;  %1379 = vmatpush.msra.mxu2 %v432_v12  ;;  %v501_v9 = vld [vmem:[%s2623_s1 + $0x240] sm:$0xff]  ;;  %v1904_v11 = vld [vmem:[%s1709_s20 + $0x18] sm:$0xff] }
  0x30   : > { %1380 = vmatpush.msra.mxu3 %v432_v12  ;;  %589 = vmatpush.msra.mxu0 %v432_v12  ;;  %v1908_v12 = vld [vmem:[%s1709_s20 + $0xb0] sm:$0xff] }
  0x31   : > { %1381 = vmatpush.msra.mxu1 %v431_v13  ;;  %1382 = vmatpush.msra.mxu2 %v431_v13 }
  0x32   : > { %1383 = vmatpush.msra.mxu3 %v431_v13  ;;  %590 = vmatpush.msra.mxu0 %v431_v13  ;;  %v463_v13 = vld [vmem:[%s2623_s1 + $0x110] sm:$0xff] }
  0x33   : > { %1384 = vmatpush.msra.mxu1 %v430_v14  ;;  %1385 = vmatpush.msra.mxu2 %v430_v14 }
  0x34   : > { %1386 = vmatpush.msra.mxu3 %v430_v14  ;;  %591 = vmatpush.msra.mxu0 %v430_v14  ;;  %v480_v14 = vld [vmem:[%s2623_s1 + $0x198] sm:$0xff] }
  0x35   : > { %1387 = vmatpush.msra.mxu1 %v429_v15  ;;  %1388 = vmatpush.msra.mxu2 %v429_v15 }
  0x36   : > { %605 = vmatmul.f32.vlgmr.msra.gmra.mxu1 %v1715_v16  ;;  %617 = vmatmul.f32.vlgmr.msra.gmra.mxu2 %v1718_v17 }
  0x37   : > { %707 = vmatpush.msrb.mxu2 %v476_v18  ;;  %1389 = vmatpush.msra.mxu3 %v429_v15  ;;  %v339_v18 = vrot.slane %v1751_v27, 2 }
  0x38   : > { %642 = vmatpush.msrb.mxu1 %v460_v19  ;;  %629 = vmatmul.f32.vlgmr.msra.gmra.mxu3 %v1727_v20  ;;  %v340_v19 = vrot.slane %v1840_v55, 2 }
  0x39   : > { %708 = vmatpush.msrb.mxu2 %v475_v21  ;;  %772 = vmatpush.msrb.mxu3 %v492_v22  ;;  %v447_v21 = vld [vmem:[%s2623_s1 + $0x90] sm:$0xff]  ;;  %v462_v22 = vld [vmem:[%s2623_s1 + $0x108] sm:$0xff] }
  0x3a   : > { %643 = vmatpush.msrb.mxu1 %v459_v23  ;;  %592 = vmatpush.msra.mxu0 %v429_v15  ;;  %v500_v15 = vld [vmem:[%s2623_s1 + $0x238] sm:$0xff]  ;;  %v282_v23 = vrot.slane %v1751_v27, 1 }
  0x3b   : > { %709 = vmatpush.msrb.mxu2 %v474_v24  ;;  %773 = vmatpush.msrb.mxu3 %v491_v25  ;;  %v283_v24 = vrot.slane %v1840_v55, 1  ;;  %v479_v25 = vld [vmem:[%s2623_s1 + $0x190] sm:$0xff] }
  0x3c   : > { %644 = vmatpush.msrb.mxu1 %v458_v26  ;;  %593 = vmatmul.f32.vlgmr.msra.gmra.mxu0 %v1751_v27  ;;  %v499_v26 = vld [vmem:[%s2623_s1 + $0x230] sm:$0xff]  ;;  %v446_v27 = vld [vmem:[%s2623_s1 + $0x88] sm:$0xff] }
  0x3d   : > { %710 = vmatpush.msrb.mxu2 %v473_v28  ;;  %774 = vmatpush.msrb.mxu3 %v490_v29  ;;  %v461_v28 = vld [vmem:[%s2623_s1 + $0x100] sm:$0xff]  ;;  %v478_v29 = vld [vmem:[%s2623_s1 + $0x188] sm:$0xff] }
  0x3e   : > { %645 = vmatpush.msrb.mxu1 %v457_v30  ;;  %620 = vmatmul.f32.gmra.mxu2 %v1763_v31  ;;  %v498_v30 = vld [vmem:[%s2623_s1 + $0x228] sm:$0xff] }
  0x3f   : > { %608 = vmatmul.f32.gmra.mxu1 %v1766_v32  ;;  %711 = vmatpush.msrb.mxu2 %v472_v33  ;;  %v445_v33 = vld [vmem:[%s2623_s1 + $0x80] sm:$0xff] }
  0x40   : > { %775 = vmatpush.msrb.mxu3 %v489_v34  ;;  %646 = vmatpush.msrb.mxu1 %v456_v35  ;;  %v341_v34 = vsel %vm338_vm0, %v339_v18, %v340_v19  ;;  %v284_v35 = vsel %vm281_vm1, %v282_v23, %v283_v24  ;;  %v570_v18 = vld [vmem:[%s2623_s1 + $0x468] sm:$0xff] }
  0x41   : > { %632 = vmatmul.f32.gmra.mxu3 %v1780_v36  ;;  %712 = vmatpush.msrb.mxu2 %v471_v37  ;;  %v477_v37 = vld [vmem:[%s2623_s1 + $0x180] sm:$0xff] }
  0x42   : > { %776 = vmatpush.msrb.mxu3 %v488_v38  ;;  %837 = vmatpush.msrb.mxu0 %v508_v39  ;;  %v229_v38 = vld [vmem:[%s1709_s20 + $0x10] sm:$0x3]  ;;  %v497_v39 = vld [vmem:[%s2623_s1 + $0x220] sm:$0xff] }
  0x43   : > { %647 = vmatpush.msrb.mxu1 %v455_v40  ;;  %713 = vmatpush.msrb.mxu2 %v470_v41  ;;  %v540_v40 = vld [vmem:[%s2623_s1 + $0x378] sm:$0xff]  ;;  %v1965_v41 = vld [vmem:[%s1709_s20 + $0x20] sm:$0xff] }
  0x44   : > { %777 = vmatpush.msrb.mxu3 %v487_v42  ;;  %838 = vmatpush.msrb.mxu0 %v507_v43  ;;  %v496_v42 = vld [vmem:[%s2623_s1 + $0x218] sm:$0xff] }
  0x45   : > { %648 = vmatpush.msrb.mxu1 %v454_v44  ;;  %714 = vmatpush.msrb.mxu2 %v469_v45  ;;  %v556_v43 = vld [vmem:[%s2623_s1 + $0x3f8] sm:$0xff]  ;;  %v342_v44 = vrot.slane %v229_v38, 2 }
  0x46   : > { %778 = vmatpush.msrb.mxu3 %v486_v46  ;;  %839 = vmatpush.msrb.mxu0 %v506_v47  ;;  %v524_v45 = vld [vmem:[%s2623_s1 + $0x2f8] sm:$0xff]  ;;  %v285_v46 = vrot.slane %v229_v38, 1  ;;  %v539_v47 = vld [vmem:[%s2623_s1 + $0x370] sm:$0xff]  ;;  %v349_v38 = vrot.slane %v1715_v16, 2 }
  0x47   : > { %649 = vmatpush.msrb.mxu1 %v453_v48  ;;  %623 = vmatmul.f32.gmra.mxu2 %v1821_v49  ;;  %v495_v48 = vld [vmem:[%s2623_s1 + $0x210] sm:$0xff] }
  0x48   : > { %611 = vmatmul.f32.gmra.mxu1 %v1824_v50  ;;  %715 = vmatpush.msrb.mxu2 %v468_v51  ;;  %v555_v51 = vld [vmem:[%s2623_s1 + $0x3f0] sm:$0xff] }
  0x49   : > { %779 = vmatpush.msrb.mxu3 %v485_v52  ;;  %840 = vmatpush.msrb.mxu0 %v505_v53  ;;  %v287_v52 = vrot.slane %v1904_v11, 1  ;;  %v288_v53 = vrot.slane %v1965_v41, 1 }
  0x4a   : > { %650 = vmatpush.msrb.mxu1 %v452_v54  ;;  %596 = vmatmul.f32.gmra.mxu0 %v1840_v55  ;;  %v523_v54 = vld [vmem:[%s2623_s1 + $0x2f0] sm:$0xff]  ;;  %v538_v55 = vld [vmem:[%s2623_s1 + $0x368] sm:$0xff] }
  0x4b   : > { %635 = vmatmul.f32.gmra.mxu3 %v1844_v56  ;;  %716 = vmatpush.msrb.mxu2 %v467_v57  ;;  %v494_v57 = vld [vmem:[%s2623_s1 + $0x208] sm:$0xff] }
  0x4c   : > { %780 = vmatpush.msrb.mxu3 %v484_v58  ;;  %841 = vmatpush.msrb.mxu0 %v504_v59  ;;  %v343_v58 = vsel %vm338_vm0, %v340_v19, %v342_v44  ;;  %v286_v59 = vsel %vm281_vm1, %v283_v24, %v285_v46  ;;  %v535_v19 = vld [vmem:[%s2623_s1 + $0x350] sm:$0xff]  ;;  %v517_v44 = vld [vmem:[%s2623_s1 + $0x2c0] sm:$0xff] }
  0x4d   : > { %651 = vmatpush.msrb.mxu1 %v451_v60  ;;  %717 = vmatpush.msrb.mxu2 %v466_v61  ;;  %v554_v60 = vld [vmem:[%s2623_s1 + $0x3e8] sm:$0xff]  ;;  %v493_v61 = vld [vmem:[%s2623_s1 + $0x200] sm:$0xff] }
  0x4e   : > { %781 = vmatpush.msrb.mxu3 %v483_v62  ;;  %842 = vmatpush.msrb.mxu0 %v503_v63  ;;  %v522_v62 = vld [vmem:[%s2623_s1 + $0x2e8] sm:$0xff]  ;;  %v289_v63 = vsel %vm281_vm1, %v287_v52, %v288_v53  ;;  %v548_v52 = vld [vmem:[%s2623_s1 + $0x3b8] sm:$0xff] }
  0x4f   : > { %652 = vmatpush.msrb.mxu1 %v450_v0  ;;  %718 = vmatpush.msrb.mxu2 %v465_v1  ;;  %v572_v0 = vld [vmem:[%s2623_s1 + $0x478] sm:$0xff]  ;;  %v344_v1 = vrot.slane %v1904_v11, 2 }
  0x50   : > { %782 = vmatpush.msrb.mxu3 %v482_v2  ;;  %843 = vmatpush.msrb.mxu0 %v502_v3  ;;  %v345_v2 = vrot.slane %v1965_v41, 2  ;;  %v232_v3 = vld [vmem:[%s1709_s20 + $0x28] sm:$0x3] }
  0x51   : > { %653 = vmatpush.msrb.mxu1 %v449_v4  ;;  %626 = vmatmul.f32.gmra.mxu2 %v1885_v5  ;;  %v537_v4 = vld [vmem:[%s2623_s1 + $0x360] sm:$0xff]  ;;  %v347_v24 = vrot.slane %v232_v3, 2 }
  0x52   : > { %614 = vmatmul.f32.gmra.mxu1 %v1888_v6  ;;  %719 = vmatpush.msrb.mxu2 %v464_v7  ;;  %v553_v7 = vld [vmem:[%s2623_s1 + $0x3e0] sm:$0xff] }
  0x53   : > { %783 = vmatpush.msrb.mxu3 %v481_v8  ;;  %844 = vmatpush.msrb.mxu0 %v501_v9  ;;  %v521_v8 = vld [vmem:[%s2623_s1 + $0x2e0] sm:$0xff]  ;;  %v571_v9 = vld [vmem:[%s2623_s1 + $0x470] sm:$0xff] }
  0x54   : > { %654 = vmatpush.msrb.mxu1 %v448_v10  ;;  %599 = vmatmul.f32.gmra.mxu0 %v1904_v11  ;;  %v536_v10 = vld [vmem:[%s2623_s1 + $0x358] sm:$0xff] }
  0x55   : > { %638 = vmatmul.f32.gmra.mxu3 %v1908_v12  ;;  %720 = vmatpush.msrb.mxu2 %v463_v13  ;;  %v552_v13 = vld [vmem:[%s2623_s1 + $0x3d8] sm:$0xff] }
  0x56   : > { %784 = vmatpush.msrb.mxu3 %v480_v14  ;;  %845 = vmatpush.msrb.mxu0 %v500_v15  ;;  %v520_v14 = vld [vmem:[%s2623_s1 + $0x2d8] sm:$0xff]  ;;  %v2039_v15 = vsel %vm338_vm0, %v344_v1, %v345_v2 }
  0x57   : > { %655 = vmatpush.msrb.mxu1 %v447_v21  ;;  %721 = vmatpush.msrb.mxu2 %v462_v22  ;;  %v569_v21 = vld [vmem:[%s2623_s1 + $0x460] sm:$0xff]  ;;  %v551_v22 = vld [vmem:[%s2623_s1 + $0x3d0] sm:$0xff]  ;;  %v564_v1 = vld [vmem:[%s2623_s1 + $0x438] sm:$0xff] }
  0x58   : > { %785 = vmatpush.msrb.mxu3 %v479_v25  ;;  %846 = vmatpush.msrb.mxu0 %v499_v26  ;;  %v568_v25 = vld [vmem:[%s2623_s1 + $0x458] sm:$0xff]  ;;  %v519_v26 = vld [vmem:[%s2623_s1 + $0x2d0] sm:$0xff] }
  0x59   : > { %656 = vmatpush.msrb.mxu1 %v446_v27  ;;  %722 = vmatpush.msrb.mxu2 %v461_v28  ;;  %v534_v27 = vld [vmem:[%s2623_s1 + $0x348] sm:$0xff] }
  0x5a   : > { %786 = vmatpush.msrb.mxu3 %v478_v29  ;;  %847 = vmatpush.msrb.mxu0 %v498_v30  ;;  %v550_v28 = vld [vmem:[%s2623_s1 + $0x3c8] sm:$0xff]  ;;  %v567_v29 = vld [vmem:[%s2623_s1 + $0x450] sm:$0xff] }
  0x5b   : > { %657 = vmatpush.msrb.mxu1 %v445_v33  ;;  %723 = vmatmul.f32.vlgmr.msrb.gmra.mxu2 %v341_v34  ;;  %v518_v30 = vld [vmem:[%s2623_s1 + $0x2c8] sm:$0xff]  ;;  %v292_v33 = vrot.slane %v1715_v16, 1  ;;  %v293_v34 = vrot.slane %v1766_v32, 1 }
  0x5c   : > { %658 = vmatmul.f32.vlgmr.msrb.gmra.mxu1 %v284_v35  ;;  %787 = vmatpush.msrb.mxu3 %v477_v37  ;;  %v2077_v35 = vsel %vm338_vm0, %v345_v2, %v347_v24  ;;  %v515_v2 = vld [vmem:[%s2623_s1 + $0x2b0] sm:$0xff] }
  0x5d   : > { %848 = vmatpush.msrb.mxu0 %v497_v39  ;;  %967 = vmatpush.msra.mxu2 %v540_v40  ;;  %v2081_v37 = vsel %vm281_vm1, %v292_v33, %v293_v34  ;;  %v350_v39 = vrot.slane %v1766_v32, 2  ;;  %v235_v40 = vld [vmem:[%s1709_s20 + $0x40] sm:$0x3]  ;;  %v241_v24 = vld [vmem:[%s1709_s20 + $0x70] sm:$0x3] }
  0x5e   : > { %602 = vmatmul.f32.gmra.mxu0 %v1965_v41  ;;  %788 = vmatmul.f32.vlgmr.msrb.gmra.mxu3 %v1904_v11  ;;  %v290_v11 = vrot.slane %v232_v3, 1  ;;  %v362_v33 = vrot.slane %v241_v24, 2 }
  0x5f   : > { %849 = vmatpush.msrb.mxu0 %v496_v42  ;;  %1032 = vmatpush.msra.mxu3 %v556_v43  ;;  %v549_v42 = vld [vmem:[%s2623_s1 + $0x3c0] sm:$0xff]  ;;  %v566_v43 = vld [vmem:[%s2623_s1 + $0x448] sm:$0xff]  ;;  %v2101_v46 = vsel %vm338_vm0, %v349_v38, %v350_v39  ;;  %v544_v38 = vld [vmem:[%s2623_s1 + $0x398] sm:$0xff] }
  0x60   : > { %902 = vmatpush.msra.mxu1 %v524_v45  ;;  %968 = vmatpush.msra.mxu2 %v539_v47  ;;  %v291_v23 = vsel %vm281_vm1, %v288_v53, %v290_v11  ;;  %v295_v45 = vrot.slane %v235_v40, 1  ;;  %v565_v53 = vld [vmem:[%s2623_s1 + $0x440] sm:$0xff]  ;;  %v563_v11 = vld [vmem:[%s2623_s1 + $0x430] sm:$0xff] }
  0x61   : > { %850 = vmatpush.msrb.mxu0 %v495_v48  ;;  %1033 = vmatpush.msra.mxu3 %v555_v51  ;;  %v352_v48 = vrot.slane %v235_v40, 2  ;;  %v532_v51 = vld [vmem:[%s2623_s1 + $0x338] sm:$0xff] }
  0x62   : > { %903 = vmatpush.msra.mxu1 %v523_v54  ;;  %969 = vmatpush.msra.mxu2 %v538_v55  ;;  %v2105_v47 = vsel %vm281_vm1, %v293_v34, %v295_v45  ;;  %v516_v54 = vld [vmem:[%s2623_s1 + $0x2b8] sm:$0xff]  ;;  %v297_v55 = vrot.slane %v1824_v50, 1  ;;  %v364_v45 = vrot.slane %v1821_v49, 2 }
  0x63   : > { %851 = vmatpush.msrb.mxu0 %v494_v57  ;;  %726 = vmatmul.f32.gmra.mxu2 %v343_v58  ;;  %v298_v57 = vrot.slane %v1888_v6, 1  ;;  %v2125_v58 = vsel %vm338_vm0, %v350_v39, %v352_v48  ;;  %v528_v34 = vld [vmem:[%s2623_s1 + $0x318] sm:$0xff]  ;;  %v561_v39 = vld [vmem:[%s2623_s1 + $0x420] sm:$0xff]  ;;  %v365_v48 = vrot.slane %v1885_v5, 2 }
  0x64   : > { %661 = vmatmul.f32.gmra.mxu1 %v286_v59  ;;  %1034 = vmatpush.msra.mxu3 %v554_v60  ;;  %v354_v60 = vrot.slane %v1824_v50, 2  ;;  %v512_v40 = vld [vmem:[%s2623_s1 + $0x298] sm:$0xff] }
  0x65   : > { %852 = vmatpush.msrb.mxu0 %v493_v61  ;;  %904 = vmatpush.msra.mxu1 %v522_v62  ;;  %v2129_v59 = vsel %vm281_vm1, %v297_v55, %v298_v57  ;;  %v355_v61 = vrot.slane %v1888_v6, 2  ;;  %v238_v62 = vld [vmem:[%s1709_s20 + $0x58] sm:$0x3]  ;;  %v511_v55 = vld [vmem:[%s2623_s1 + $0x290] sm:$0xff] }
  0x66   : > { %791 = vmatmul.f32.gmra.mxu3 %v1965_v41  ;;  %853 = vmatmul.f32.vlgmr.msrb.gmra.mxu0 %v289_v63  ;;  %v533_v41 = vld [vmem:[%s2623_s1 + $0x340] sm:$0xff]  ;;  %v300_v3 = vrot.slane %v238_v62, 1 }
  0x67   : > { %1097 = vmatpush.msra.mxu0 %v572_v0  ;;  %970 = vmatpush.msra.mxu2 %v537_v4  ;;  %v547_v0 = vld [vmem:[%s2623_s1 + $0x3b0] sm:$0xff]  ;;  %v2150_v4 = vsel %vm338_vm0, %v354_v60, %v355_v61  ;;  %v2248_v60 = vsel %vm338_vm0, %v364_v45, %v365_v48 }
  0x68   : > { %1035 = vmatpush.msra.mxu3 %v553_v7  ;;  %905 = vmatpush.msra.mxu1 %v521_v8  ;;  %v2154_v7 = vsel %vm281_vm1, %v298_v57, %v300_v3  ;;  %v357_v8 = vrot.slane %v238_v62, 2  ;;  %v312_v3 = vrot.slane %v1727_v20, 1 }
  0x69   : > { %1098 = vmatpush.msra.mxu0 %v571_v9  ;;  %971 = vmatpush.msra.mxu2 %v536_v10  ;;  %v530_v9 = vld [vmem:[%s2623_s1 + $0x328] sm:$0xff] }
  0x6a   : > { %1036 = vmatpush.msra.mxu3 %v552_v13  ;;  %906 = vmatpush.msra.mxu1 %v520_v14  ;;  %v546_v10 = vld [vmem:[%s2623_s1 + $0x3a8] sm:$0xff]  ;;  %v302_v14 = vrot.slane %v1718_v17, 1 }
  0x6b   : > { %729 = vmatmul.f32.gmra.mxu2 %v2039_v15  ;;  %1099 = vmatpush.msra.mxu0 %v570_v18  ;;  %v514_v13 = vld [vmem:[%s2623_s1 + $0x2a8] sm:$0xff]  ;;  %v303_v18 = vrot.slane %v1763_v31, 1 }
  0x6c   : > { %664 = vmatmul.f32.gmra.mxu1 %v289_v63  ;;  %972 = vmatpush.msra.mxu2 %v535_v19  ;;  %v531_v63 = vld [vmem:[%s2623_s1 + $0x330] sm:$0xff]  ;;  %v2174_v19 = vsel %vm338_vm0, %v355_v61, %v357_v8  ;;  %v313_v8 = vrot.slane %v1780_v36, 1 }
  0x6d   : > { %1100 = vmatpush.msra.mxu0 %v569_v21  ;;  %1037 = vmatpush.msra.mxu3 %v551_v22  ;;  %v2178_v21 = vsel %vm281_vm1, %v302_v14, %v303_v18  ;;  %v359_v22 = vrot.slane %v1718_v17, 2  ;;  %v370_v14 = vrot.slane %v1780_v36, 2 }
  0x6e   : > { %794 = vmatmul.f32.gmra.mxu3 %v1715_v16  ;;  %856 = vmatmul.f32.gmra.mxu0 %v291_v23 }
  0x6f   : > { %1101 = vmatpush.msra.mxu0 %v568_v25  ;;  %907 = vmatpush.msra.mxu1 %v519_v26  ;;  %v529_v25 = vld [vmem:[%s2623_s1 + $0x320] sm:$0xff] }
  0x70   : > { %973 = vmatpush.msra.mxu2 %v534_v27  ;;  %1038 = vmatpush.msra.mxu3 %v550_v28  ;;  %v545_v26 = vld [vmem:[%s2623_s1 + $0x3a0] sm:$0xff]  ;;  %v305_v28 = vrot.slane %v241_v24, 1 }
  0x71   : > { %1102 = vmatpush.msra.mxu0 %v567_v29  ;;  %908 = vmatpush.msra.mxu1 %v518_v30  ;;  %v513_v27 = vld [vmem:[%s2623_s1 + $0x2a0] sm:$0xff] }
  0x72   : > { %974 = vmatpush.msra.mxu2 %v533_v41  ;;  %1039 = vmatpush.msra.mxu3 %v549_v42  ;;  %v2203_v30 = vsel %vm281_vm1, %v303_v18, %v305_v28  ;;  %v307_v41 = vrot.slane %v1821_v49, 1  ;;  %v308_v42 = vrot.slane %v1885_v5, 1  ;;  %v247_v18 = vld [vmem:[%s1709_s20 + $0xa0] sm:$0x3] }
  0x73   : > { %732 = vmatmul.f32.gmra.mxu2 %v2077_v35  ;;  %1103 = vmatpush.msra.mxu0 %v566_v43  ;;  %v509_v24 = vld [vmem:[%s2623_s1 + $0x280] sm:$0xff] }
  0x74   : > { %667 = vmatmul.f32.gmra.mxu1 %v291_v23  ;;  %975 = vmatpush.msra.mxu2 %v532_v51  ;;  %v360_v23 = vrot.slane %v1763_v31, 2  ;;  %v244_v51 = vld [vmem:[%s1709_s20 + $0x88] sm:$0x3] }
  0x75   : > { %909 = vmatpush.msra.mxu1 %v517_v44  ;;  %1040 = vmatpush.msra.mxu3 %v548_v52  ;;  %v2227_v44 = vsel %vm281_vm1, %v307_v41, %v308_v42  ;;  %v527_v52 = vld [vmem:[%s2623_s1 + $0x310] sm:$0xff]  ;;  %v310_v57 = vrot.slane %v244_v51, 1  ;;  %v367_v62 = vrot.slane %v244_v51, 2  ;;  %v374_v51 = vrot.slane %v1844_v56, 2 }
  0x76   : > { %797 = vmatmul.f32.gmra.mxu3 %v1766_v32  ;;  %859 = vmatmul.f32.gmra.mxu0 %v2081_v37  ;;  %v2199_v29 = vsel %vm338_vm0, %v359_v22, %v360_v23  ;;  %v2223_v43 = vsel %vm338_vm0, %v360_v23, %v362_v33  ;;  %v525_v22 = vld [vmem:[%s2623_s1 + $0x300] sm:$0xff]  ;;  %v372_v33 = vrot.slane %v247_v18, 2 }
  0x77   : > { %1104 = vmatpush.msra.mxu0 %v565_v53  ;;  %910 = vmatpush.msra.mxu1 %v516_v54  ;;  %v543_v53 = vld [vmem:[%s2623_s1 + $0x390] sm:$0xff]  ;;  %v560_v54 = vld [vmem:[%s2623_s1 + $0x418] sm:$0xff]  ;;  %v2252_v61 = vsel %vm281_vm1, %v308_v42, %v310_v57  ;;  %v541_v23 = vld [vmem:[%s2623_s1 + $0x380] sm:$0xff] }
  0x78   : > { %976 = vmatpush.msra.mxu2 %v531_v63  ;;  %1041 = vmatpush.msra.mxu3 %v547_v0  ;;  %v526_v63 = vld [vmem:[%s2623_s1 + $0x308] sm:$0xff]  ;;  %v2320_v41 = vsel %vm338_vm0, %v370_v14, %v372_v33 }
  0x79   : > { %1105 = vmatpush.msra.mxu0 %v564_v1  ;;  %911 = vmatpush.msra.mxu1 %v515_v2  ;;  %v542_v0 = vld [vmem:[%s2623_s1 + $0x388] sm:$0xff]  ;;  %v559_v1 = vld [vmem:[%s2623_s1 + $0x410] sm:$0xff] }
  0x7a   : > { %977 = vmatpush.msra.mxu2 %v530_v9  ;;  %1042 = vmatpush.msra.mxu3 %v546_v10  ;;  %v510_v2 = vld [vmem:[%s2623_s1 + $0x288] sm:$0xff]  ;;  %v2272_v9 = vsel %vm338_vm0, %v365_v48, %v367_v62  ;;  %v2276_v10 = vsel %vm281_vm1, %v312_v3, %v313_v8 }
  0x7b   : > { %735 = vmatmul.f32.gmra.mxu2 %v2101_v46  ;;  %1106 = vmatpush.msra.mxu0 %v563_v11 }
  0x7c   : > { %670 = vmatmul.f32.gmra.mxu1 %v2081_v37  ;;  %978 = vmatpush.msra.mxu2 %v529_v25  ;;  %v315_v25 = vrot.slane %v247_v18, 1 }
  0x7d   : > { %912 = vmatpush.msra.mxu1 %v514_v13  ;;  %1043 = vmatpush.msra.mxu3 %v545_v26  ;;  %v369_v13 = vrot.slane %v1727_v20, 2 }
  0x7e   : > { %800 = vmatmul.f32.gmra.mxu3 %v1824_v50  ;;  %862 = vmatmul.f32.gmra.mxu0 %v2105_v47 }
  0x7f   : > { %913 = vmatpush.msra.mxu1 %v513_v27  ;;  %979 = vmatpush.msra.mxu2 %v528_v34  ;;  %v2299_v26 = vsel %vm338_vm0, %v369_v13, %v370_v14 }
  0x80   : > { %1044 = vmatpush.msra.mxu3 %v544_v38  ;;  %v557_v38 = vld [vmem:[%s2623_s1 + $0x400] sm:$0xff] }
  0x81   : > { %914 = vmatpush.msra.mxu1 %v512_v40  ;;  %980 = vmatpush.msra.mxu2 %v527_v52  ;;  %v318_v40 = vrot.slane %v1908_v12, 1  ;;  %v375_v52 = vrot.slane %v1908_v12, 2 }
  0x82   : > { %1045 = vmatpush.msra.mxu3 %v543_v53  ;;  %v250_v53 = vld [vmem:[%s1709_s20 + $0xb8] sm:$0x3] }
  0x83   : > { %738 = vmatmul.f32.gmra.mxu2 %v2125_v58  ;;  %915 = vmatpush.msra.mxu1 %v511_v55  ;;  %v320_v57 = vrot.slane %v250_v53, 1  ;;  %v2339_v62 = vsel %vm338_vm0, %v374_v51, %v375_v52  ;;  %v377_v3 = vrot.slane %v250_v53, 2 }
  0x84   : > { %673 = vmatmul.f32.gmra.mxu1 %v2105_v47  ;;  %981 = vmatpush.msra.mxu2 %v526_v63  ;;  %v2344_v63 = vld [vmem:[%s2624_s2] ss:$0 sm:$0xff] }
  0x85   : > { %1046 = vmatpush.msra.mxu3 %v542_v0  ;;  %916 = vmatpush.msra.mxu1 %v510_v2  ;;  %v2348_v0 = vld [vmem:[%s1709_s20 + $0xc0] sm:$0xff] }
  0x86   : > { %803 = vmatmul.f32.gmra.mxu3 %v1888_v6  ;;  %865 = vmatmul.f32.gmra.mxu0 %v2129_v59 }
  0x87   : > { %982 = vmatpush.msra.mxu2 %v525_v22  ;;  %1047 = vmatpush.msra.mxu3 %v541_v23  ;;  %v398_v22 = vrot.slane %v2348_v0, 1 }
  0x88   : > { %917 = vmatpush.msra.mxu1 %v509_v24 }
  0x8b   : > { %741 = vmatmul.f32.gmra.mxu2 %v2150_v4 }
  0x8c   : > { %676 = vmatmul.f32.gmra.mxu1 %v2129_v59 }
  0x8e   : > { %806 = vmatmul.f32.gmra.mxu3 %v1718_v17  ;;  %868 = vmatmul.f32.gmra.mxu0 %v2154_v7  ;;  %v562_v17 = vld [vmem:[%s2623_s1 + $0x428] sm:$0xff] }
  0x8f   : > { %1107 = vmatpush.msra.mxu0 %v562_v17  ;;  %v2305_v17 = vsel %vm281_vm1, %v313_v8, %v315_v25  ;;  %v2358_v8 = vld [vmem:[%s1709_s20 + $0xc8] sm:$0xff] }
  0x90   : > { %v399_v23 = vrot.slane %v2358_v8, 1 }
  0x91   : > { %1108 = vmatpush.msra.mxu0 %v561_v39  ;;  %v317_v39 = vrot.slane %v1844_v56, 1 }
  0x92   : > { %v2374_v25 = vsel %vm281_vm1, %v398_v22, %v399_v23 }
  0x93   : > { %744 = vmatmul.f32.gmra.mxu2 %v2174_v19  ;;  %1109 = vmatpush.msra.mxu0 %v560_v54  ;;  %v2326_v45 = vsel %vm281_vm1, %v317_v39, %v318_v40 }
  0x94   : > { %679 = vmatmul.f32.gmra.mxu1 %v2154_v7 }
  0x95   : > { %1110 = vmatpush.msra.mxu0 %v559_v1  ;;  %v2351_v1 = vsel %vm281_vm1, %v318_v40, %v320_v57 }
  0x96   : > { %809 = vmatmul.f32.gmra.mxu3 %v1763_v31  ;;  %871 = vmatmul.f32.gmra.mxu0 %v2178_v21 }
  0x9b   : > { %747 = vmatmul.f32.gmra.mxu2 %v2199_v29 }
  0x9c   : > { %682 = vmatmul.f32.gmra.mxu1 %v2178_v21 }
  0x9e   : > { %812 = vmatmul.f32.gmra.mxu3 %v1821_v49  ;;  %874 = vmatmul.f32.gmra.mxu0 %v2203_v30 }
  0xa3   : > { %750 = vmatmul.f32.gmra.mxu2 %v2223_v43 }
  0xa4   : > { %685 = vmatmul.f32.gmra.mxu1 %v2203_v30 }
  0xa6   : > { %815 = vmatmul.f32.gmra.mxu3 %v1885_v5  ;;  %877 = vmatmul.f32.gmra.mxu0 %v2227_v44 }
  0xab   : > { %753 = vmatmul.f32.gmra.mxu2 %v2248_v60 }
  0xac   : > { %688 = vmatmul.f32.gmra.mxu1 %v2227_v44 }
  0xae   : > { %818 = vmatmul.f32.gmra.mxu3 %v1727_v20  ;;  %880 = vmatmul.f32.gmra.mxu0 %v2252_v61  ;;  %v558_v20 = vld [vmem:[%s2623_s1 + $0x408] sm:$0xff] }
  0xaf   : > { %1111 = vmatpush.msra.mxu0 %v558_v20  ;;  %v2370_v20 = vsel %vm338_vm0, %v375_v52, %v377_v3 }
  0xb1   : > { %1112 = vmatpush.msra.mxu0 %v557_v38  ;;  %v2378_v38 = vld [vmem:[%s1709_s20 + $0xd0] sm:$0x3] }
  0xb2   : > { %2630 = vst [vmem:[#allocation6_spill] sm:$0xff] %v2378_v38  ;;  %v401_v40 = vrot.slane %v2378_v38, 1 }
  0xb3   : > { %756 = vmatmul.f32.gmra.mxu2 %v2272_v9  ;;  %v2278_v11 = vpop.f32.mrf.mxu1 }
  0xb4   : > { %691 = vmatmul.f32.gmra.mxu1 %v2252_v61  ;;  %v2392_v3 = vsel %vm281_vm1, %v399_v23, %v401_v40 }
  0xb6   : > { %821 = vmatmul.f32.gmra.mxu3 %v1780_v36  ;;  %883 = vmatmul.f32.gmra.mxu0 %v2276_v10 }
  0xb9   : > { %v2301_v36 = vpop.f32.mrf.mxu2  ;;  %v594_v34 = vpop.f32.mrf.mxu0 }
  0xba   : > { %v595_v57 = vadd.f32 %v2344_v63, %v594_v34 }
  0xbb   : > { %759 = vmatmul.f32.gmra.mxu2 %v2299_v26  ;;  %v2307_v27 = vpop.f32.mrf.mxu3 }
  0xbc   : > { %694 = vmatmul.f32.gmra.mxu1 %v2276_v10  ;;  %v2310_v28 = vpop.f32.mrf.mxu1 }
  0xbe   : > { %824 = vmatmul.f32.gmra.mxu3 %v1844_v56  ;;  %886 = vmatmul.f32.gmra.mxu0 %v2305_v17 }
  0xc1   : > { %v2322_v42 = vpop.f32.mrf.mxu2 }
  0xc3   : > { %762 = vmatmul.f32.gmra.mxu2 %v2320_v41 }
  0xc4   : > { %697 = vmatmul.f32.gmra.mxu1 %v2305_v17  ;;  %v2329_v48 = vpop.f32.mrf.mxu3 }
  0xc5   : > { %v2334_v54 = vpop.f32.mrf.mxu1 }
  0xc6   : > { %827 = vmatmul.f32.gmra.mxu3 %v1908_v12  ;;  %889 = vmatmul.f32.gmra.mxu0 %v2326_v45 }
  0xc7   : > { %v597_v55 = vpop.f32.mrf.mxu0 }
  0xc8   : > { %v598_v34 = vadd.f32 %v2344_v63, %v597_v55 }
  0xca   : > { %v624_v56 = vpop.f32.mrf.mxu2 }
  0xcb   : > { %765 = vmatmul.f32.gmra.mxu2 %v2339_v62  ;;  %v2354_v2 = vadd.f32 %v2344_v63, %v624_v56 }
  0xcc   : > { %700 = vmatmul.f32.gmra.mxu1 %v2326_v45 }
  0xce   : > { %830 = vmatmul.f32.gmra.mxu3 %v2348_v0  ;;  %892 = vmatmul.f32.gmra.mxu0 %v2351_v1  ;;  %v636_v13 = vpop.f32.mrf.mxu3 }
  0xcf   : > { %v2362_v14 = vpop.f32.mrf.mxu1  ;;  %v2365_v18 = vadd.f32 %v2344_v63, %v636_v13 }
  0xd1   : > { %2629 = vst [vmem:[#allocation5_spill] sm:$0xff] %v2365_v18  ;;  %v600_v24 = vpop.f32.mrf.mxu0 }
  0xd3   : > { %768 = vmatmul.f32.gmra.mxu2 %v2370_v20 }
  0xd4   : > { %703 = vmatmul.f32.gmra.mxu1 %v2351_v1  ;;  %v627_v33 = vpop.f32.mrf.mxu2 }
  0xd5   : > { %v2381_v39 = vadd.f32 %v2344_v63, %v627_v33 }
  0xd6   : > { %833 = vmatmul.f32.gmra.mxu3 %v2358_v8  ;;  %895 = vmatmul.f32.gmra.mxu0 %v2374_v25 }
  0xd8   : > { %v639_v51 = vpop.f32.mrf.mxu3 }
  0xd9   : > { %v2387_v52 = vadd.f32 %v2344_v63, %v639_v51  ;;  %v659_v53 = vpop.f32.mrf.mxu1 }
  0xda   : > { %v660_v13 = vadd.f32 %v659_v53, %v595_v57 }
  0xdb   : > { %2631 = vst [vmem:[#allocation7_spill] sm:$0xff] %v2387_v52  ;;  %v603_v56 = vpop.f32.mrf.mxu0  ;;  %983 = vmatmul.f32.vlgmr.msra.gmra.mxu2 %v1715_v16 }
  0xdc   : > { %918 = vmatmul.f32.vlgmr.msra.gmra.mxu1 %v2039_v15 }
  0xde   : > { %898 = vmatmul.f32.gmra.mxu0 %v2392_v3  ;;  %1048 = vmatmul.f32.vlgmr.msra.gmra.mxu3 %v2081_v37  ;;  %v724_v22 = vpop.f32.mrf.mxu2 }
  0xdf   : > { %v725_v33 = vadd.f32 %v724_v22, %v660_v13 }
  0xe1   : > { %v662_v51 = vpop.f32.mrf.mxu1  ;;  %v789_v52 = vpop.f32.mrf.mxu3 }
  0xe2   : > { %v2397_v18 = vadd.f32 %v789_v52, %v725_v33  ;;  %v663_v16 = vadd.f32 %v662_v51, %v598_v34  ;;  %v601_v52 = vadd.f32 %v2344_v63, %v600_v24  ;;  %v604_v24 = vadd.f32 %v2344_v63, %v603_v56 }
  0xe3   : > { %v2400_v38 = vpop.f32.mrf.mxu0  ;;  %986 = vmatmul.f32.gmra.mxu2 %v1766_v32  ;;  %v607_v56 = vadd.f32 %v2344_v63, %v2278_v11  ;;  %v610_v11 = vadd.f32 %v2344_v63, %v2310_v28  ;;  %v613_v28 = vadd.f32 %v2344_v63, %v2334_v54  ;;  %v616_v54 = vadd.f32 %v2344_v63, %v2362_v14 }
  0xe4   : > { %921 = vmatmul.f32.gmra.mxu1 %v2077_v35 }
  0xe6   : > { %1051 = vmatmul.f32.gmra.mxu3 %v2105_v47  ;;  %1113 = vmatmul.f32.vlgmr.msra.gmra.mxu0 %v2101_v46  ;;  %v727_v15 = vpop.f32.mrf.mxu2 }
  0xe7   : > { %v728_v37 = vadd.f32 %v727_v15, %v663_v16 }
  0xe9   : > { %v665_v23 = vpop.f32.mrf.mxu1  ;;  %v792_v40 = vpop.f32.mrf.mxu3 }
  0xea   : > { %v2406_v53 = vadd.f32 %v792_v40, %v728_v37  ;;  %v666_v32 = vadd.f32 %v665_v23, %v601_v52  ;;  %v1465_v37 = vld [vmem:[%s1709_s20 + $0x60] sm:$0xff] }
  0xeb   : > { %v2409_v55 = vpop.f32.mrf.mxu0  ;;  %989 = vmatmul.f32.gmra.mxu2 %v1824_v50 }
  0xec   : > { %924 = vmatmul.f32.gmra.mxu1 %v2101_v46 }
  0xee   : > { %1054 = vmatmul.f32.gmra.mxu3 %v2129_v59  ;;  %1116 = vmatmul.f32.gmra.mxu0 %v2125_v58  ;;  %v730_v35 = vpop.f32.mrf.mxu2 }
  0xef   : > { %v731_v47 = vadd.f32 %v730_v35, %v666_v32 }
  0xf1   : > { %v668_v57 = vpop.f32.mrf.mxu1  ;;  %v795_v13 = vpop.f32.mrf.mxu3 }
  0xf2   : > { %v2415_v22 = vadd.f32 %v795_v13, %v731_v47  ;;  %v669_v50 = vadd.f32 %v668_v57, %v604_v24 }
  0xf3   : > { %v2418_v33 = vpop.f32.mrf.mxu0  ;;  %992 = vmatmul.f32.gmra.mxu2 %v1888_v6 }
  0xf4   : > { %927 = vmatmul.f32.gmra.mxu1 %v2125_v58 }
  0xf6   : > { %1057 = vmatmul.f32.gmra.mxu3 %v2154_v7  ;;  %1119 = vmatmul.f32.gmra.mxu0 %v2150_v4  ;;  %v733_v46 = vpop.f32.mrf.mxu2 }
  0xf7   : > { %v734_v59 = vadd.f32 %v733_v46, %v669_v50 }
  0xf9   : > { %v671_v51 = vpop.f32.mrf.mxu1  ;;  %v798_v34 = vpop.f32.mrf.mxu3 }
  0xfa   : > { %v2424_v16 = vadd.f32 %v798_v34, %v734_v59  ;;  %v672_v6 = vadd.f32 %v671_v51, %v607_v56  ;;  %v619_v34 = vadd.f32 %v2344_v63, %v2301_v36  ;;  %v622_v36 = vadd.f32 %v2344_v63, %v2322_v42 }
  0xfb   : > { %v2428_v15 = vpop.f32.mrf.mxu0  ;;  %995 = vmatmul.f32.gmra.mxu2 %v1465_v37 }
  0xfc   : > { %930 = vmatmul.f32.gmra.mxu1 %v2150_v4 }
  0xfe   : > { %1060 = vmatmul.f32.gmra.mxu3 %v2178_v21  ;;  %1122 = vmatmul.f32.gmra.mxu0 %v2174_v19  ;;  %v736_v58 = vpop.f32.mrf.mxu2 }
  0xff   : > { %v737_v7 = vadd.f32 %v736_v58, %v672_v6 }
 0x101   : > { %v674_v23 = vpop.f32.mrf.mxu1  ;;  %v801_v40 = vpop.f32.mrf.mxu3 }
 0x102   : > { %v2434_v52 = vadd.f32 %v801_v40, %v737_v7  ;;  %v675_v4 = vadd.f32 %v674_v23, %v610_v11 }
 0x103   : > { %v2438_v32 = vpop.f32.mrf.mxu0  ;;  %998 = vmatmul.f32.gmra.mxu2 %v1763_v31 }
 0x104   : > { %933 = vmatmul.f32.gmra.mxu1 %v2174_v19 }
 0x106   : > { %1063 = vmatmul.f32.gmra.mxu3 %v2203_v30  ;;  %1125 = vmatmul.f32.gmra.mxu0 %v2199_v29  ;;  %v739_v21 = vpop.f32.mrf.mxu2 }
 0x107   : > { %v740_v35 = vadd.f32 %v739_v21, %v675_v4  ;;  %v1467_v21 = vld [vmem:[%s1709_s20 + $0x98] sm:$0xff] }
 0x109   : > { %v677_v47 = vpop.f32.mrf.mxu1  ;;  %v804_v57 = vpop.f32.mrf.mxu3 }
 0x10a   : > { %v2444_v13 = vadd.f32 %v804_v57, %v740_v35  ;;  %v678_v31 = vadd.f32 %v677_v47, %v613_v28 }
 0x10b   : > { %v2448_v24 = vpop.f32.mrf.mxu0  ;;  %1001 = vmatmul.f32.gmra.mxu2 %v1821_v49 }
 0x10c   : > { %936 = vmatmul.f32.gmra.mxu1 %v2199_v29 }
 0x10e   : > { %1066 = vmatmul.f32.gmra.mxu3 %v2227_v44  ;;  %1128 = vmatmul.f32.gmra.mxu0 %v2223_v43  ;;  %v742_v19 = vpop.f32.mrf.mxu2 }
 0x10f   : > { %v743_v30 = vadd.f32 %v742_v19, %v678_v31  ;;  %v1468_v19 = vld [vmem:[%s1709_s20 + $0xa8] sm:$0xff] }
 0x111   : > { %v680_v50 = vpop.f32.mrf.mxu1  ;;  %v807_v46 = vpop.f32.mrf.mxu3 }
 0x112   : > { %v2454_v59 = vadd.f32 %v807_v46, %v743_v30  ;;  %v681_v49 = vadd.f32 %v680_v50, %v616_v54 }
 0x113   : > { %v2458_v51 = vpop.f32.mrf.mxu0  ;;  %1004 = vmatmul.f32.gmra.mxu2 %v1885_v5  ;;  %v1466_v5 = vld [vmem:[%s1709_s20 + $0x90] sm:$0xff] }
 0x114   : > { %939 = vmatmul.f32.gmra.mxu1 %v2223_v43 }
 0x116   : > { %1069 = vmatmul.f32.gmra.mxu3 %v2252_v61  ;;  %1131 = vmatmul.f32.gmra.mxu0 %v2248_v60  ;;  %v745_v29 = vpop.f32.mrf.mxu2 }
 0x117   : > { %v746_v44 = vadd.f32 %v745_v29, %v681_v49 }
 0x119   : > { %v683_v56 = vpop.f32.mrf.mxu1  ;;  %v810_v37 = vpop.f32.mrf.mxu3 }
 0x11a   : > { %v684_v6 = vadd.f32 %v683_v56, %v619_v34  ;;  %v2466_v14 = vadd.f32 %v810_v37, %v746_v44  ;;  %v631_v44 = vadd.f32 %v2344_v63, %v2307_v27  ;;  %v405_v27 = vrot.slane %v2348_v0, 2 }
 0x11b   : > { %v2468_v58 = vpop.f32.mrf.mxu0  ;;  %1007 = vmatmul.f32.gmra.mxu2 %v1466_v5  ;;  %v406_v5 = vrot.slane %v2358_v8, 2 }
 0x11c   : > { %942 = vmatmul.f32.gmra.mxu1 %v2248_v60 }
 0x11e   : > { %1072 = vmatmul.f32.gmra.mxu3 %v2276_v10  ;;  %1134 = vmatmul.f32.gmra.mxu0 %v2272_v9  ;;  %v748_v43 = vpop.f32.mrf.mxu2 }
 0x11f   : > { %v749_v61 = vadd.f32 %v748_v43, %v684_v6  ;;  %v634_v43 = vadd.f32 %v2344_v63, %v2329_v48 }
 0x121   : > { %v686_v7 = vpop.f32.mrf.mxu1  ;;  %v813_v23 = vpop.f32.mrf.mxu3 }
 0x122   : > { %v687_v40 = vadd.f32 %v686_v7, %v622_v36  ;;  %v814_v11 = vadd.f32 %v813_v23, %v749_v61 }
 0x123   : > { %v878_v4 = vpop.f32.mrf.mxu0  ;;  %1010 = vmatmul.f32.gmra.mxu2 %v1467_v21 }
 0x124   : > { %v2477_v35 = vadd.f32 %v878_v4, %v814_v11  ;;  %945 = vmatmul.f32.gmra.mxu1 %v2272_v9  ;;  %v254_v11 = vld [vmem:[%s1709_s20 + $0xd8] sm:$0xff] }
 0x125   : > { %v415_v4 = vrot.slane %v254_v11, 1 }
 0x126   : > { %1075 = vmatmul.f32.gmra.mxu3 %v2305_v17  ;;  %1137 = vmatmul.f32.gmra.mxu0 %v2299_v26  ;;  %v751_v60 = vpop.f32.mrf.mxu2 }
 0x127   : > { %v752_v10 = vadd.f32 %v751_v60, %v687_v40  ;;  %v2632_v60 = vld [vmem:[#allocation6_spill] sm:$0xff] }
 0x129   : > { %v689_v47 = vpop.f32.mrf.mxu1  ;;  %v816_v42 = vpop.f32.mrf.mxu3 }
 0x12a   : > { %v690_v57 = vadd.f32 %v689_v47, %v2354_v2  ;;  %v817_v28 = vadd.f32 %v816_v42, %v752_v10  ;;  %v408_v10 = vrot.slane %v2632_v60, 2  ;;  %v2633_v42 = vld [vmem:[#allocation5_spill] sm:$0xff] }
 0x12b   : > { %v881_v31 = vpop.f32.mrf.mxu0  ;;  %1013 = vmatmul.f32.gmra.mxu2 %v1468_v19 }
 0x12c   : > { %v2484_v30 = vadd.f32 %v881_v31, %v817_v28  ;;  %948 = vmatmul.f32.gmra.mxu1 %v2299_v26  ;;  %v409_v19 = vsel %vm338_vm0, %v406_v5, %v408_v10 }
 0x12e   : > { %1078 = vmatmul.f32.gmra.mxu3 %v2326_v45  ;;  %1140 = vmatmul.f32.gmra.mxu0 %v2320_v41  ;;  %v754_v9 = vpop.f32.mrf.mxu2 }
 0x12f   : > { %v755_v17 = vadd.f32 %v754_v9, %v690_v57  ;;  %v256_v9 = vld [vmem:[%s1709_s20 + $0xe8] sm:$0x3] }
 0x131   : > { %v692_v50 = vpop.f32.mrf.mxu1  ;;  %v819_v46 = vpop.f32.mrf.mxu3 }
 0x132   : > { %v693_v54 = vadd.f32 %v692_v50, %v2381_v39  ;;  %v820_v49 = vadd.f32 %v819_v46, %v755_v17  ;;  %v422_v50 = vrot.slane %v254_v11, 2 }
 0x133   : > { %v884_v2 = vpop.f32.mrf.mxu0  ;;  %1016 = vmatmul.f32.gmra.mxu2 %v1908_v12 }
 0x134   : > { %v2491_v29 = vadd.f32 %v884_v2, %v820_v49  ;;  %951 = vmatmul.f32.gmra.mxu1 %v2320_v41 }
 0x136   : > { %1081 = vmatmul.f32.gmra.mxu3 %v2351_v1  ;;  %1143 = vmatmul.f32.gmra.mxu0 %v2339_v62  ;;  %v757_v26 = vpop.f32.mrf.mxu2 }
 0x137   : > { %v758_v45 = vadd.f32 %v757_v26, %v693_v54  ;;  %v418_v54 = vrot.slane %v256_v9, 1 }
 0x139   : > { %v695_v34 = vpop.f32.mrf.mxu1  ;;  %v822_v56 = vpop.f32.mrf.mxu3 }
 0x13a   : > { %v696_v39 = vadd.f32 %v695_v34, %v631_v44  ;;  %v823_v37 = vadd.f32 %v822_v56, %v758_v45  ;;  %v2634_v45 = vld [vmem:[#allocation7_spill] sm:$0xff] }
 0x13b   : > { %v887_v6 = vpop.f32.mrf.mxu0  ;;  %1019 = vmatmul.f32.gmra.mxu2 %v2348_v0  ;;  %v255_v0 = vld [vmem:[%s1709_s20 + $0xe0] sm:$0xff]  ;;  %s208_s20 = sand.u32 1, %s1539_s13  }
 0x13c   : > { %v2499_v12 = vadd.f32 %v887_v6, %v823_v37  ;;  %954 = vmatmul.f32.gmra.mxu1 %v2339_v62  ;;  %v416_v21 = vrot.slane %v255_v0, 1  ;;  %v423_v49 = vrot.slane %v255_v0, 2  ;;  %s1330_s21 = sshll.u32 %s208_s20, 7  ;;  %s1195_s8 = scalar_lea.sflag [#allocation3], %s208_s20 }
 0x13d   : > { %s2538_s24 = scalar_lea.vmem [#allocation2], %s1330_s21 }
 0x13e   : > { %1084 = vmatmul.f32.gmra.mxu3 %v2374_v25  ;;  %1146 = vmatmul.f32.gmra.mxu0 %v2370_v20  ;;  %v760_v41 = vpop.f32.mrf.mxu2  ;;  %v407_v25 = vsel %vm338_vm0, %v405_v27, %v406_v5  ;;  %v424_v37 = vsel %vm338_vm0, %v422_v50, %v423_v49  ;;  %v425_v27 = vrot.slane %v256_v9, 2  ;;  %s1211_s6 = sshll.u32 %s2538_s24, 4  ;;  %s1212_s6 = int_to_ptr.vmem [resolvable:$true] %s1211_s6 }
 0x13f   : > { %v761_v1 = vadd.f32 %v760_v41, %v696_v39  ;;  %v419_v39 = vsel %vm281_vm1, %v416_v21, %v418_v54 }
 0x141   : > { %v698_v61 = vpop.f32.mrf.mxu1  ;;  %v825_v36 = vpop.f32.mrf.mxu3 }
 0x142   : > { %v699_v7 = vadd.f32 %v698_v61, %v634_v43  ;;  %v826_v23 = vadd.f32 %v825_v36, %v761_v1  ;;  %v855_v36 = vadd.f32 %v2400_v38, %v2397_v18 }
 0x143   : > { %v890_v62 = vpop.f32.mrf.mxu0  ;;  %1022 = vmatmul.f32.gmra.mxu2 %v2358_v8 }
 0x144   : > { %v2510_v40 = vadd.f32 %v890_v62, %v826_v23  ;;  %957 = vmatmul.f32.gmra.mxu1 %v2370_v20  ;;  %v417_v20 = vsel %vm281_vm1, %v415_v4, %v416_v21  ;;  %v426_v23 = vsel %vm338_vm0, %v423_v49, %v425_v27  ;;  %v858_v21 = vadd.f32 %v2409_v55, %v2406_v53 }
 0x145   : > { %v864_v49 = vadd.f32 %v2428_v15, %v2424_v16 }
 0x146   : > { %1087 = vmatmul.f32.gmra.mxu3 %v2392_v3  ;;  %1149 = vmatmul.f32.gmra.mxu0 %v407_v25  ;;  %v763_v48 = vpop.f32.mrf.mxu2 }
 0x147   : > { %v764_v63 = vadd.f32 %v763_v48, %v699_v7 }
 0x149   : > { %v701_v47 = vpop.f32.mrf.mxu1  ;;  %v828_v8 = vpop.f32.mrf.mxu3 }
 0x14a   : > { %v702_v57 = vadd.f32 %v701_v47, %v2633_v42  ;;  %v829_v28 = vadd.f32 %v828_v8, %v764_v63 }
 0x14b   : > { %v893_v31 = vpop.f32.mrf.mxu0  ;;  %1025 = vmatmul.f32.gmra.mxu2 %v254_v11 }
 0x14c   : > { %v2520_v3 = vadd.f32 %v893_v31, %v829_v28  ;;  %960 = vmatmul.f32.gmra.mxu1 %v407_v25  ;;  %v861_v31 = vadd.f32 %v2418_v33, %v2415_v22 }
 0x14e   : > { %1090 = vmatmul.f32.gmra.mxu3 %v417_v20  ;;  %1152 = vmatmul.f32.gmra.mxu0 %v409_v19  ;;  %v766_v17 = vpop.f32.mrf.mxu2 }
 0x14f   : > { %v767_v46 = vadd.f32 %v766_v17, %v702_v57 }
 0x151   : > { %v704_v2 = vpop.f32.mrf.mxu1  ;;  %v831_v26 = vpop.f32.mrf.mxu3 }
 0x152   : > { %v705_v44 = vadd.f32 %v704_v2, %v2634_v45  ;;  %v832_v34 = vadd.f32 %v831_v26, %v767_v46 }
 0x153   : > { %v896_v56 = vpop.f32.mrf.mxu0  ;;  %1028 = vmatmul.f32.gmra.mxu2 %v255_v0 }
 0x154   : > { %v2526_v6 = vadd.f32 %v896_v56, %v832_v34  ;;  %963 = vmatmul.f32.gmra.mxu1 %v409_v19 }
 0x156   : > { %1093 = vmatmul.f32.gmra.mxu3 %v419_v39  ;;  %1155 = vmatmul.f32.gmra.mxu0 %v424_v37  ;;  %v769_v41 = vpop.f32.mrf.mxu2  ;;  %v867_v37 = vadd.f32 %v2438_v32, %v2434_v52 }
 0x157   : > { %v770_v1 = vadd.f32 %v769_v41, %v705_v44 }
 0x159   : > { %v834_v5 = vpop.f32.mrf.mxu3  ;;  %v919_v43 = vpop.f32.mrf.mxu1 }
 0x15a   : > { %v835_v61 = vadd.f32 %v834_v5, %v770_v1  ;;  %v920_v25 = vadd.f32 %v919_v43, %v855_v36 }
 0x15b   : > { %v899_v7 = vpop.f32.mrf.mxu0 }
 0x15c   : > { %v2531_v62 = vadd.f32 %v899_v7, %v835_v61  ;;  %v870_v7 = vadd.f32 %v2448_v24, %v2444_v13 }
 0x15e   : > { %1158 = vmatmul.f32.gmra.mxu0 %v426_v23  ;;  %v984_v11 = vpop.f32.mrf.mxu2 }
 0x15f   : > { %v985_v0 = vadd.f32 %v984_v11, %v920_v25 }
 0x161   : > { %v922_v48 = vpop.f32.mrf.mxu1  ;;  %v1049_v63 = vpop.f32.mrf.mxu3 }
 0x162   : > { %v1050_v4 = vadd.f32 %v1049_v63, %v985_v0  ;;  %v923_v38 = vadd.f32 %v922_v48, %v858_v21  ;;  %v873_v21 = vadd.f32 %v2458_v51, %v2454_v59 }
 0x163   : > { %v1114_v60 = vpop.f32.mrf.mxu0 }
 0x164   : > { %v1115_v18 = vadd.f32 %v1114_v60, %v1050_v4 }
 0x166   : > { %v1162_v10 = vmax.f32 %v1115_v18, 0.0  ;;  %v987_v47 = vpop.f32.mrf.mxu2 }
 0x167   : > { %v988_v8 = vadd.f32 %v987_v47, %v923_v38 }
 0x168   : > { %1178 = vst [vmem:[%s2538_s24] sm:$0xff] %v1162_v10 }
 0x169   : > { %v925_v42 = vpop.f32.mrf.mxu1  ;;  %v1052_v57 = vpop.f32.mrf.mxu3 }
 0x16a   : > { %v1053_v28 = vadd.f32 %v1052_v57, %v988_v8  ;;  %v926_v53 = vadd.f32 %v925_v42, %v861_v31  ;;  %v876_v57 = vadd.f32 %v2468_v58, %v2466_v14 }
 0x16b   : > { %v1117_v20 = vpop.f32.mrf.mxu0 }
 0x16c   : > { %v1118_v19 = vadd.f32 %v1117_v20, %v1053_v28 }
 0x16e   : > { %v1163_v55 = vmax.f32 %v1118_v19, 0.0  ;;  %v990_v9 = vpop.f32.mrf.mxu2 }
 0x16f   : > { %v991_v17 = vadd.f32 %v990_v9, %v926_v53 }
 0x170   : > { %1179 = vst [vmem:[%s2538_s24 + $0x8] sm:$0xff] %v1163_v55 }
 0x171   : > { %v928_v50 = vpop.f32.mrf.mxu1  ;;  %v1055_v46 = vpop.f32.mrf.mxu3 }
 0x172   : > { %v1056_v54 = vadd.f32 %v1055_v46, %v991_v17  ;;  %v929_v45 = vadd.f32 %v928_v50, %v864_v49 }
 0x173   : > { %v1120_v2 = vpop.f32.mrf.mxu0 }
 0x174   : > { %v1121_v26 = vadd.f32 %v1120_v2, %v1056_v54 }
 0x176   : > { %v1164_v44 = vmax.f32 %v1121_v26, 0.0  ;;  %v993_v22 = vpop.f32.mrf.mxu2 }
 0x177   : > { %v994_v33 = vadd.f32 %v993_v22, %v929_v45 }
 0x178   : > { %1180 = vst [vmem:[%s2538_s24 + $0x10] sm:$0xff] %v1164_v44 }
 0x179   : > { %v931_v34 = vpop.f32.mrf.mxu1  ;;  %v1058_v56 = vpop.f32.mrf.mxu3 }
 0x17a   : > { %v1059_v39 = vadd.f32 %v1058_v56, %v994_v33  ;;  %v932_v27 = vadd.f32 %v931_v34, %v867_v37 }
 0x17b   : > { %v1123_v41 = vpop.f32.mrf.mxu0 }
 0x17c   : > { %v1124_v1 = vadd.f32 %v1123_v41, %v1059_v39 }
 0x17e   : > { %v1165_v5 = vmax.f32 %v1124_v1, 0.0  ;;  %v996_v16 = vpop.f32.mrf.mxu2 }
 0x17f   : > { %v997_v15 = vadd.f32 %v996_v16, %v932_v27 }
 0x180   : > { %1181 = vst [vmem:[%s2538_s24 + $0x18] sm:$0xff] %v1165_v5 }
 0x181   : > { %v934_v43 = vpop.f32.mrf.mxu1  ;;  %v1061_v61 = vpop.f32.mrf.mxu3 }
 0x182   : > { %v1062_v36 = vadd.f32 %v1061_v61, %v997_v15  ;;  %v935_v11 = vadd.f32 %v934_v43, %v870_v7 }
 0x183   : > { %v1126_v23 = vpop.f32.mrf.mxu0 }
 0x184   : > { %v1127_v25 = vadd.f32 %v1126_v23, %v1062_v36 }
 0x186   : > { %v1166_v0 = vmax.f32 %v1127_v25, 0.0  ;;  %v999_v52 = vpop.f32.mrf.mxu2 }
 0x187   : > { %v1000_v32 = vadd.f32 %v999_v52, %v935_v11 }
 0x188   : > { %1182 = vst [vmem:[%s2538_s24 + $0x20] sm:$0xff] %v1166_v0 }
 0x189   : > { %v937_v48 = vpop.f32.mrf.mxu1  ;;  %v1064_v63 = vpop.f32.mrf.mxu3 }
 0x18a   : > { %v1065_v4 = vadd.f32 %v1064_v63, %v1000_v32  ;;  %v938_v38 = vadd.f32 %v937_v48, %v873_v21 }
 0x18b   : > { %v1129_v60 = vpop.f32.mrf.mxu0 }
 0x18c   : > { %v1130_v18 = vadd.f32 %v1129_v60, %v1065_v4 }
 0x18e   : > { %v1167_v10 = vmax.f32 %v1130_v18, 0.0  ;;  %v1002_v13 = vpop.f32.mrf.mxu2 }
 0x18f   : > { %v1003_v24 = vadd.f32 %v1002_v13, %v938_v38 }
 0x190   : > { %1183 = vst [vmem:[%s2538_s24 + $0x28] sm:$0xff] %v1167_v10 }
 0x191   : > { %v940_v47 = vpop.f32.mrf.mxu1  ;;  %v1067_v8 = vpop.f32.mrf.mxu3 }
 0x192   : > { %v1068_v42 = vadd.f32 %v1067_v8, %v1003_v24  ;;  %v941_v20 = vadd.f32 %v940_v47, %v876_v57 }
 0x193   : > { %v1132_v28 = vpop.f32.mrf.mxu0 }
 0x194   : > { %v1133_v31 = vadd.f32 %v1132_v28, %v1068_v42 }
 0x196   : > { %v1168_v19 = vmax.f32 %v1133_v31, 0.0  ;;  %v1005_v59 = vpop.f32.mrf.mxu2 }
 0x197   : > { %v1006_v51 = vadd.f32 %v1005_v59, %v941_v20 }
 0x198   : > { %1184 = vst [vmem:[%s2538_s24 + $0x30] sm:$0xff] %v1168_v19 }
 0x199   : > { %v943_v53 = vpop.f32.mrf.mxu1  ;;  %v1070_v55 = vpop.f32.mrf.mxu3 }
 0x19a   : > { %v1071_v9 = vadd.f32 %v1070_v55, %v1006_v51  ;;  %v944_v46 = vadd.f32 %v943_v53, %v2477_v35 }
 0x19b   : > { %v1135_v17 = vpop.f32.mrf.mxu0 }
 0x19c   : > { %v1136_v50 = vadd.f32 %v1135_v17, %v1071_v9 }
 0x19e   : > { %v1169_v54 = vmax.f32 %v1136_v50, 0.0  ;;  %v1008_v49 = vpop.f32.mrf.mxu2 }
 0x19f   : > { %v1009_v2 = vadd.f32 %v1008_v49, %v944_v46 }
 0x1a0   : > { %1185 = vst [vmem:[%s2538_s24 + $0x38] sm:$0xff] %v1169_v54 }
 0x1a1   : > { %v946_v14 = vpop.f32.mrf.mxu1  ;;  %v1073_v58 = vpop.f32.mrf.mxu3 }
 0x1a2   : > { %v1074_v26 = vadd.f32 %v1073_v58, %v1009_v2  ;;  %v947_v22 = vadd.f32 %v946_v14, %v2484_v30 }
 0x1a3   : > { %v1138_v45 = vpop.f32.mrf.mxu0 }
 0x1a4   : > { %v1139_v44 = vadd.f32 %v1138_v45, %v1074_v26 }
 0x1a6   : > { %v1170_v33 = vmax.f32 %v1139_v44, 0.0  ;;  %v1011_v34 = vpop.f32.mrf.mxu2 }
 0x1a7   : > { %v1012_v56 = vadd.f32 %v1011_v34, %v947_v22 }
 0x1a8   : > { %1186 = vst [vmem:[%s2538_s24 + $0x40] sm:$0xff] %v1170_v33 }
 0x1a9   : > { %v949_v39 = vpop.f32.mrf.mxu1  ;;  %v1076_v37 = vpop.f32.mrf.mxu3 }
 0x1aa   : > { %v1077_v41 = vadd.f32 %v1076_v37, %v1012_v56  ;;  %v950_v27 = vadd.f32 %v949_v39, %v2491_v29 }
 0x1ab   : > { %v1141_v35 = vpop.f32.mrf.mxu0 }
 0x1ac   : > { %v1142_v1 = vadd.f32 %v1141_v35, %v1077_v41 }
 0x1ae   : > { %v1171_v5 = vmax.f32 %v1142_v1, 0.0  ;;  %v1014_v16 = vpop.f32.mrf.mxu2 }
 0x1af   : > { %v1015_v15 = vadd.f32 %v1014_v16, %v950_v27 }
 0x1b0   : > { %1187 = vst [vmem:[%s2538_s24 + $0x48] sm:$0xff] %v1171_v5 }
 0x1b1   : > { %v952_v43 = vpop.f32.mrf.mxu1  ;;  %v1079_v61 = vpop.f32.mrf.mxu3 }
 0x1b2   : > { %v1080_v36 = vadd.f32 %v1079_v61, %v1015_v15  ;;  %v953_v23 = vadd.f32 %v952_v43, %v2499_v12 }
 0x1b3   : > { %v1144_v30 = vpop.f32.mrf.mxu0 }
 0x1b4   : > { %v1145_v7 = vadd.f32 %v1144_v30, %v1080_v36 }
 0x1b6   : > { %v1172_v25 = vmax.f32 %v1145_v7, 0.0  ;;  %v1017_v11 = vpop.f32.mrf.mxu2 }
 0x1b7   : > { %v1018_v0 = vadd.f32 %v1017_v11, %v953_v23 }
 0x1b8   : > { %1188 = vst [vmem:[%s2538_s24 + $0x50] sm:$0xff] %v1172_v25 }
 0x1b9   : > { %v955_v52 = vpop.f32.mrf.mxu1  ;;  %v1082_v32 = vpop.f32.mrf.mxu3 }
 0x1ba   : > { %v1083_v48 = vadd.f32 %v1082_v32, %v1018_v0  ;;  %v956_v4 = vadd.f32 %v955_v52, %v2510_v40 }
 0x1bb   : > { %v1147_v29 = vpop.f32.mrf.mxu0 }
 0x1bc   : > { %v1148_v63 = vadd.f32 %v1147_v29, %v1083_v48 }
 0x1be   : > { %v1173_v21 = vmax.f32 %v1148_v63, 0.0  ;;  %v1020_v60 = vpop.f32.mrf.mxu2 }
 0x1bf   : > { %v1021_v18 = vadd.f32 %v1020_v60, %v956_v4 }
 0x1c0   : > { %1189 = vst [vmem:[%s2538_s24 + $0x58] sm:$0xff] %v1173_v21 }
 0x1c1   : > { %v958_v38 = vpop.f32.mrf.mxu1  ;;  %v1085_v10 = vpop.f32.mrf.mxu3 }
 0x1c2   : > { %v1086_v13 = vadd.f32 %v1085_v10, %v1021_v18  ;;  %v959_v47 = vadd.f32 %v958_v38, %v2520_v3 }
 0x1c3   : > { %v1150_v12 = vpop.f32.mrf.mxu0 }
 0x1c4   : > { %v1151_v24 = vadd.f32 %v1150_v12, %v1086_v13 }
 0x1c6   : > { %v1174_v8 = vmax.f32 %v1151_v24, 0.0  ;;  %v1023_v42 = vpop.f32.mrf.mxu2 }
 0x1c7   : > { %v1024_v57 = vadd.f32 %v1023_v42, %v959_v47 }
 0x1c8   : > { %1190 = vst [vmem:[%s2538_s24 + $0x60] sm:$0xff] %v1174_v8 }
 0x1c9   : > { %v961_v28 = vpop.f32.mrf.mxu1  ;;  %v1088_v40 = vpop.f32.mrf.mxu3 }
 0x1ca   : > { %v1089_v31 = vadd.f32 %v1088_v40, %v1024_v57  ;;  %v962_v59 = vadd.f32 %v961_v28, %v2526_v6 }
 0x1cb   : > { %v1153_v20 = vpop.f32.mrf.mxu0 }
 0x1cc   : > { %v1154_v19 = vadd.f32 %v1153_v20, %v1089_v31 }
 0x1ce   : > { %v1175_v51 = vmax.f32 %v1154_v19, 0.0  ;;  %v1026_v53 = vpop.f32.mrf.mxu2 }
 0x1cf   : > { %v1027_v55 = vadd.f32 %v1026_v53, %v962_v59 }
 0x1d0   : > { %1191 = vst [vmem:[%s2538_s24 + $0x68] sm:$0xff] %v1175_v51 }
 0x1d1   : > { %v1091_v3 = vpop.f32.mrf.mxu3  ;;  %v964_v9 = vpop.f32.mrf.mxu1 }
 0x1d2   : > { %v1092_v17 = vadd.f32 %v1091_v3, %v1027_v55  ;;  %v965_v54 = vadd.f32 %v964_v9, %v2531_v62 }
 0x1d3   : > { %v1156_v50 = vpop.f32.mrf.mxu0 }
 0x1d4   : > { %v1157_v46 = vadd.f32 %v1156_v50, %v1092_v17 }
 0x1d6   : > { %v1176_v6 = vmax.f32 %v1157_v46, 0.0  ;;  %v1029_v49 = vpop.f32.mrf.mxu2 }
 0x1d7   : > { %v1030_v2 = vadd.f32 %v1029_v49, %v965_v54 }
 0x1d8   : > { %1192 = vst [vmem:[%s2538_s24 + $0x70] sm:$0xff] %v1176_v6 }
 0x1d9   : > { %v1094_v14 = vpop.f32.mrf.mxu3 }
 0x1da   : > { %v1095_v58 = vadd.f32 %v1094_v14, %v1030_v2 }
 0x1db   : > { %v1159_v26 = vpop.f32.mrf.mxu0 }
 0x1dc   : > { %v1160_v45 = vadd.f32 %v1159_v26, %v1095_v58 }
 0x1de   : > { %v1177_v44 = vmax.f32 %v1160_v45, 0.0 }
 0x1e0   : > { %1193 = vst [vmem:[%s2538_s24 + $0x78] sm:$0xff] %v1177_v44 }
 0x1e1   : > { %1496 = shalt.err (!%p1493_p6)
}
 0x1e2   : > { %s1565_s20 = smov 128   ;;  %s1566_s24 = smov 8  }
 0x1e3   : > { %1391 = dma.vmem_to_hbm [thread:$0]  (%p1638_p3), %s1212_s6, 2048, %s1214_s7, %s1195_s8, %s1565_s20, %s1565_s20, %s1566_s24  }
 0x1e4 PF: > { %p1397_p7 = scmp.ge.s32.totalorder %s1563_s19, 2  ;;  %s1228_s4 = sand.u32 1, %s1535_s12  }
 0x1e5   : > { %s1229_s15 = scalar_lea.sflag [#allocation3], %s1228_s4 }
 0x1e6   : > { %p1394_p9 = pnand %p1397_p7, %p1647_p8 }
 0x1e8   : > { %p1395_p10 = pneg %p1394_p9 }
 0x1ea   : > { %1530 = dma.done.wait (%p1395_p10), %s1229_s15, 2048  }
 0x1eb   : > { %1532 = vsyncadd (%p1395_p10), %s1229_s15, 4294965248  ;;  %s16_s19 = sadd.s32 1, %s1563_s19   ;;  %s2635_s12 = smov %s1539_s13 }
 0x1ec   : > { %p13_p11 = scmp.ge.s32.totalorder %s16_s19, 6   ;;  %s2636_s13 = smov %s1543_s14 }
 0x1ed   : > { %s2637_s14 = smov %s1656_s30  ;;  %s2638_s15 = smov %s1555_s17 }
 0x1ee   : > { %s2639_s16 = smov %s1559_s18  ;;  %s2640_s17 = smov %s2643_s22 }
 0x1ef   : > { %s2641_s18 = smov %s2647_s23  ;;  %15 = sbr.rel (!%p13_p11) target bundleno = 5 (0x5), region = 74 }
 0x1f4   :  { %1235 = vsyncpa [#allocation3], 1 }
 0x1f5   :  { %1237 = vsyncpa [#allocation3 + $0x1], 1 }

</bundles_post_ra>
